<compile_context>
chip_gen: v7x
topology: tpu7x:2x2x1
jax: 0.10.0
libtpu: 0.0.40
codegen_flags: <defaults>
</compile_context>

<pallas_src>
import numpy as np

import jax
import jax.numpy as jnp
from jax.experimental import pallas as pl
from jax.experimental.pallas import tpu as pltpu


def _col_select_matrix(W, Wo):
    """(2W, 6*Wo) 0/1 matrix implementing the stride-2 horizontal taps.

    Input lanes are row-parity packed: lane j < W is column j of the even input
    row, lane W + j is column j of the odd input row.  Output column
    t*Wo + wo (t = half*3 + kw, half 0=even/1=odd row, kw in {0,1,2}) selects
    input column 2*wo + kw - 1 of that row half; out-of-range columns (the
    pad-1 border) stay all-zero.
    """
    S = np.zeros((2 * W, 6 * Wo), np.float32)
    for half in range(2):
        for kw in range(3):
            t = half * 3 + kw
            for wo in range(Wo):
                src = 2 * wo + kw - 1
                if 0 <= src < W:
                    S[half * W + src, t * Wo + wo] = 1.0
    return jnp.asarray(S)


def downsample_forward(x, w1, s1, b1, wdw, s2, b2, w3, s3, b3):
    """DownSample forward (eval-mode BN), NCHW in / NCHW out.

    x:   (N, Cin, H, W) float32, H and W even.
    w1:  (hidden, Cin)   1x1 expansion conv weight (hidden == Cin, expansion=1)
    wdw: (hidden, 3, 3)  3x3 depthwise conv weight (stride 2, pad 1)
    w3:  (Cout, hidden)  1x1 projection conv weight
    s*/b*: per-channel BN scale/bias (gamma/sqrt(var+eps), beta - mean*scale).
    """
    N, Cin, H, W = x.shape
    assert H % 2 == 0 and W % 2 == 0, "stride-2 path assumes even H, W"
    Ho, Wo = H // 2, W // 2
    hidden = w1.shape[0]
    Cout = w3.shape[0]
    f32 = jnp.float32

    # ---- fold BN scales into the conv weights (trace-time, free) -----------
    w1f = (w1 * s1[:, None]).astype(f32)                        # (hidden, Cin)
    b1f = b1.astype(f32).reshape(hidden, 1)                     # (hidden, 1)
    wdwf = (wdw.reshape(hidden, 9) * s2[:, None]).astype(f32)   # (hidden, 9), t = 3*kh+kw
    w3f = (w3 * s3[:, None]).astype(f32)                        # (Cout, hidden)
    b3f = b3.astype(f32).reshape(Cout, 1)                       # (Cout, 1)

    # Per-output-row depthwise weight table (hidden*Ho, 9).  The kh=0 ("row
    # above") taps are zeroed on each channel's first output row, so the
    # in-kernel sublane roll's wrap-around never contributes (top pad row).
    wdw_exp = jnp.repeat(wdwf, Ho, axis=0)                      # (hidden*Ho, 9)
    not_first_row = (jnp.tile(jnp.arange(Ho), hidden) != 0).astype(f32)[:, None]
    wdw_exp = jnp.concatenate(
        [wdw_exp[:, 0:3] * not_first_row, wdw_exp[:, 3:9]], axis=1)
    b2_exp = jnp.repeat(b2.astype(f32), Ho)[:, None]            # (hidden*Ho, 1)

    s_mat = _col_select_matrix(W, Wo)                           # (2W, 6*Wo)

    # Row-parity packing: (N, Cin, H, W) -> (N, Cin, Ho, 2W).  Lane j < W is
    # input row 2*ho, lane W + j is input row 2*ho+1.  Pure row-major
    # regrouping -> no HBM copy (replaces the 4 strided parity slices).
    x_packed = x.astype(f32).reshape(N, Cin, Ho, 2 * W)

    def kernel(x_ref, s_ref, wdw_ref, b2_ref, w1_ref, b1_ref, w3_ref, b3_ref,
               out_ref):
        # -- 1x1 expansion (Cin -> hidden) + BN + ReLU6 ----------------------
        # Channel counts are tiny (expansion = 1): a few VPU FMAs beat a
        # K=Cin matmul; spatial width stays on the lane axis.
        w1_v = w1_ref[...]
        b1_v = b1_ref[...]
        planes = []
        for o in range(hidden):
            acc = jnp.broadcast_to(b1_v[o:o + 1, 0:1], (Ho, 2 * W))
            for c in range(Cin):
                acc = acc + w1_v[o:o + 1, c:c + 1] * x_ref[c]
            planes.append(jnp.clip(acc, 0.0, 6.0))
        a1 = jnp.concatenate(planes, axis=0)                    # (hidden*Ho, 2W)

        # -- 3x3 depthwise, stride 2, pad 1 + BN + ReLU6 ---------------------
        # Horizontal taps + column-parity selection: one small MXU matmul.
        p = jnp.dot(a1, s_ref[...], preferred_element_type=jnp.float32)
        e_taps = p[:, 0:3 * Wo]                 # input row 2*ho     (kh = 1)
        o_taps = p[:, 3 * Wo:6 * Wo]            # input row 2*ho + 1 (kh = 2)
        # Input row 2*ho - 1 = previous odd row: sublane roll by one output
        # row; wrap-around rows carry zero weight in wdw_ref (border mask).
        u_taps = pltpu.roll(o_taps, shift=1, axis=0)            # (kh = 0)

        w_v = wdw_ref[...]                                      # (hidden*Ho, 9)
        dw = jnp.zeros((hidden * Ho, Wo), jnp.float32)
        for kw in range(3):
            sl = slice(kw * Wo, (kw + 1) * Wo)
            dw = dw + w_v[:, kw:kw + 1] * u_taps[:, sl]
            dw = dw + w_v[:, 3 + kw:4 + kw] * e_taps[:, sl]
            dw = dw + w_v[:, 6 + kw:7 + kw] * o_taps[:, sl]
        a2 = jnp.clip(dw + b2_ref[...], 0.0, 6.0)               # (hidden*Ho, Wo)

        # -- 1x1 projection (hidden -> Cout) + BN (no activation) ------------
        w3_v = w3_ref[...]
        b3_v = b3_ref[...]
        outs = []
        for o in range(Cout):
            acc = jnp.broadcast_to(b3_v[o:o + 1, 0:1], (Ho, Wo))
            for c in range(hidden):
                acc = acc + w3_v[o:o + 1, c:c + 1] * a2[c * Ho:(c + 1) * Ho, :]
            outs.append(acc)
        # Single contiguous slab store (no per-channel masked stores).
        out_ref[...] = jnp.concatenate(outs, axis=0)            # (Cout*Ho, Wo)

    def const2d(arr):
        return pl.BlockSpec(arr.shape, lambda n: (0, 0))

    out = pl.pallas_call(
        kernel,
        out_shape=jax.ShapeDtypeStruct((N, Cout * Ho, Wo), f32),
        grid=(N,),
        in_specs=[
            pl.BlockSpec((None, Cin, Ho, 2 * W), lambda n: (n, 0, 0, 0)),
            const2d(s_mat),
            const2d(wdw_exp),
            const2d(b2_exp),
            const2d(w1f),
            const2d(b1f),
            const2d(w3f),
            const2d(b3f),
        ],
        out_specs=pl.BlockSpec((None, Cout * Ho, Wo), lambda n: (n, 0, 0)),
        compiler_params=pltpu.CompilerParams(dimension_semantics=("parallel",)),
    )(x_packed, s_mat, wdw_exp, b2_exp, w1f, b1f, w3f, b3f)

    # Free row-major reshape back to NCHW (N, Cout, Ho, Wo).
    return out.reshape(N, Cout, Ho, Wo)


def reference_forward(x, w1, s1, b1, wdw, s2, b2, w3, s3, b3):
    """Pure-JAX reference (eval-mode BN), NCHW in / NCHW out."""
    N, Cin, H, W = x.shape
    hidden = w1.shape[0]
    Ho, Wo = H // 2, W // 2
    a1 = jnp.einsum("oc,nchw->nohw", w1, x.astype(jnp.float32))
    a1 = jnp.clip(a1 * s1[None, :, None, None] + b1[None, :, None, None], 0.0, 6.0)
    ap = jnp.pad(a1, ((0, 0), (0, 0), (1, 1), (1, 1)))
    dw = jnp.zeros((N, hidden, Ho, Wo), jnp.float32)
    for kh in range(3):
        for kw in range(3):
            dw = dw + (ap[:, :, kh:kh + 2 * Ho:2, kw:kw + 2 * Wo:2]
                       * wdw[None, :, kh, kw, None, None])
    a2 = jnp.clip(dw * s2[None, :, None, None] + b2[None, :, None, None], 0.0, 6.0)
    y = jnp.einsum("oc,nchw->nohw", w3, a2)
    return y * s3[None, :, None, None] + b3[None, :, None, None]


def make_bn_params(key, c, eps=1e-5):
    k1, k2, k3, k4 = jax.random.split(key, 4)
    gamma = jax.random.uniform(k1, (c,), minval=0.5, maxval=1.5)
    beta = jax.random.normal(k2, (c,)) * 0.1
    mean = jax.random.normal(k3, (c,)) * 0.1
    var = jax.random.uniform(k4, (c,), minval=0.5, maxval=1.5)
    scale = gamma / jnp.sqrt(var + eps)
    bias = beta - mean * scale
    return scale.astype(jnp.float32), bias.astype(jnp.float32)


if __name__ == "__main__":
    key = jax.random.PRNGKey(0)
    N, Cin, H, W = 2, 4, 16, 16
    Cout = 8
    hidden = Cin * 1                               # expansion = 1

    kx, kw1, kdw, kw3, kb1, kb2, kb3 = jax.random.split(key, 7)
    x = jax.random.normal(kx, (N, Cin, H, W), jnp.float32)
    w1 = (jax.random.normal(kw1, (hidden, Cin)) * 0.5).astype(jnp.float32)
    wdw = (jax.random.normal(kdw, (hidden, 3, 3)) * 0.3).astype(jnp.float32)
    w3 = (jax.random.normal(kw3, (Cout, hidden)) * 0.5).astype(jnp.float32)
    s1, b1 = make_bn_params(kb1, hidden)
    s2, b2 = make_bn_params(kb2, hidden)
    s3, b3 = make_bn_params(kb3, Cout)

    y = downsample_forward(x, w1, s1, b1, wdw, s2, b2, w3, s3, b3)
    y = jax.block_until_ready(y)

    y_ref = reference_forward(x, w1, s1, b1, wdw, s2, b2, w3, s3, b3)
    assert y.shape == (N, Cout, H // 2, W // 2), y.shape
    if not bool(jnp.allclose(y, y_ref, atol=2e-2, rtol=2e-2)):
        raise AssertionError("Pallas kernel does not match reference")
    print("KERNEL_OK")
</pallas_src>

<mosaic_0001>
module attributes {stable_mosaic.version = 11 : i64} {
  func.func @kernel(%arg0: i32, %arg1: memref<1x4x8x32xf32, #tpu.memory_space<vmem>>, %arg2: memref<32x48xf32, #tpu.memory_space<vmem>>, %arg3: memref<32x9xf32, #tpu.memory_space<vmem>>, %arg4: memref<32x1xf32, #tpu.memory_space<vmem>>, %arg5: memref<4x4xf32, #tpu.memory_space<vmem>>, %arg6: memref<4x1xf32, #tpu.memory_space<vmem>>, %arg7: memref<8x4xf32, #tpu.memory_space<vmem>>, %arg8: memref<8x1xf32, #tpu.memory_space<vmem>>, %arg9: memref<1x64x8xf32, #tpu.memory_space<vmem>>) attributes {dimension_semantics = [#tpu.dimension_semantics<parallel>], iteration_bounds = array<i64: 2>, scalar_prefetch = 0 : i64, scratch_operands = 0 : i64, tpu.core_type = #tpu.core_type<tc>, window_params = [{transform_indices = @transform_0, window_bounds = array<i64: 1, 4, 8, 32>}, {pipeline_mode = #tpu.pipeline_mode<synchronous>, transform_indices = @transform_1, window_bounds = array<i64: 32, 48>}, {pipeline_mode = #tpu.pipeline_mode<synchronous>, transform_indices = @transform_2, window_bounds = array<i64: 32, 9>}, {pipeline_mode = #tpu.pipeline_mode<synchronous>, transform_indices = @transform_3, window_bounds = array<i64: 32, 1>}, {pipeline_mode = #tpu.pipeline_mode<synchronous>, transform_indices = @transform_4, window_bounds = array<i64: 4, 4>}, {pipeline_mode = #tpu.pipeline_mode<synchronous>, transform_indices = @transform_5, window_bounds = array<i64: 4, 1>}, {pipeline_mode = #tpu.pipeline_mode<synchronous>, transform_indices = @transform_6, window_bounds = array<i64: 8, 4>}, {pipeline_mode = #tpu.pipeline_mode<synchronous>, transform_indices = @transform_7, window_bounds = array<i64: 8, 1>}, {transform_indices = @transform_8, window_bounds = array<i64: 1, 64, 8>}]} {
    %c0 = arith.constant 0 : index
    %c0_0 = arith.constant 0 : index
    %0 = vector.load %arg5[%c0, %c0_0] : memref<4x4xf32, #tpu.memory_space<vmem>>, vector<4x4xf32>
    %c0_1 = arith.constant 0 : index
    %c0_2 = arith.constant 0 : index
    %1 = vector.load %arg6[%c0_1, %c0_2] : memref<4x1xf32, #tpu.memory_space<vmem>>, vector<4x1xf32>
    %2 = vector.extract_strided_slice %1 {offsets = [0, 0], sizes = [1, 1], strides = [1, 1]} : vector<4x1xf32> to vector<1x1xf32>
    %3 = vector.shape_cast %2 : vector<1x1xf32> to vector<1x1xf32>
    %4 = vector.broadcast %3 : vector<1x1xf32> to vector<8x32xf32>
    %5 = vector.extract_strided_slice %0 {offsets = [0, 0], sizes = [1, 1], strides = [1, 1]} : vector<4x4xf32> to vector<1x1xf32>
    %c0_3 = arith.constant 0 : index
    %c0_4 = arith.constant 0 : index
    %c0_5 = arith.constant 0 : index
    %c0_6 = arith.constant 0 : index
    %6 = vector.load %arg1[%c0_3, %c0_4, %c0_5, %c0_6] : memref<1x4x8x32xf32, #tpu.memory_space<vmem>>, vector<1x1x8x32xf32>
    %7 = vector.shape_cast %6 : vector<1x1x8x32xf32> to vector<8x32xf32>
    %8 = vector.broadcast %5 : vector<1x1xf32> to vector<8x32xf32>
    %9 = arith.mulf %8, %7 : vector<8x32xf32>
    %10 = arith.addf %4, %9 : vector<8x32xf32>
    %11 = vector.extract_strided_slice %0 {offsets = [0, 1], sizes = [1, 1], strides = [1, 1]} : vector<4x4xf32> to vector<1x1xf32>
    %c0_7 = arith.constant 0 : index
    %c1 = arith.constant 1 : index
    %c0_8 = arith.constant 0 : index
    %c0_9 = arith.constant 0 : index
    %12 = vector.load %arg1[%c0_7, %c1, %c0_8, %c0_9] : memref<1x4x8x32xf32, #tpu.memory_space<vmem>>, vector<1x1x8x32xf32>
    %13 = vector.shape_cast %12 : vector<1x1x8x32xf32> to vector<8x32xf32>
    %14 = vector.broadcast %11 : vector<1x1xf32> to vector<8x32xf32>
    %15 = arith.mulf %14, %13 : vector<8x32xf32>
    %16 = arith.addf %10, %15 : vector<8x32xf32>
    %17 = vector.extract_strided_slice %0 {offsets = [0, 2], sizes = [1, 1], strides = [1, 1]} : vector<4x4xf32> to vector<1x1xf32>
    %c0_10 = arith.constant 0 : index
    %c2 = arith.constant 2 : index
    %c0_11 = arith.constant 0 : index
    %c0_12 = arith.constant 0 : index
    %18 = vector.load %arg1[%c0_10, %c2, %c0_11, %c0_12] : memref<1x4x8x32xf32, #tpu.memory_space<vmem>>, vector<1x1x8x32xf32>
    %19 = vector.shape_cast %18 : vector<1x1x8x32xf32> to vector<8x32xf32>
    %20 = vector.broadcast %17 : vector<1x1xf32> to vector<8x32xf32>
    %21 = arith.mulf %20, %19 : vector<8x32xf32>
    %22 = arith.addf %16, %21 : vector<8x32xf32>
    %23 = vector.extract_strided_slice %0 {offsets = [0, 3], sizes = [1, 1], strides = [1, 1]} : vector<4x4xf32> to vector<1x1xf32>
    %c0_13 = arith.constant 0 : index
    %c3 = arith.constant 3 : index
    %c0_14 = arith.constant 0 : index
    %c0_15 = arith.constant 0 : index
    %24 = vector.load %arg1[%c0_13, %c3, %c0_14, %c0_15] : memref<1x4x8x32xf32, #tpu.memory_space<vmem>>, vector<1x1x8x32xf32>
    %25 = vector.shape_cast %24 : vector<1x1x8x32xf32> to vector<8x32xf32>
    %26 = vector.broadcast %23 : vector<1x1xf32> to vector<8x32xf32>
    %27 = arith.mulf %26, %25 : vector<8x32xf32>
    %28 = arith.addf %22, %27 : vector<8x32xf32>
    %cst = arith.constant 0.000000e+00 : f32
    %cst_16 = arith.constant 6.000000e+00 : f32
    %29 = vector.broadcast %cst : f32 to vector<8x32xf32>
    %30 = arith.maximumf %29, %28 : vector<8x32xf32>
    %31 = vector.broadcast %cst_16 : f32 to vector<8x32xf32>
    %32 = arith.minimumf %31, %30 : vector<8x32xf32>
    %33 = vector.extract_strided_slice %1 {offsets = [1, 0], sizes = [1, 1], strides = [1, 1]} : vector<4x1xf32> to vector<1x1xf32>
    %34 = vector.shape_cast %33 : vector<1x1xf32> to vector<1x1xf32>
    %35 = vector.broadcast %34 : vector<1x1xf32> to vector<8x32xf32>
    %36 = vector.extract_strided_slice %0 {offsets = [1, 0], sizes = [1, 1], strides = [1, 1]} : vector<4x4xf32> to vector<1x1xf32>
    %c0_17 = arith.constant 0 : index
    %c0_18 = arith.constant 0 : index
    %c0_19 = arith.constant 0 : index
    %c0_20 = arith.constant 0 : index
    %37 = vector.load %arg1[%c0_17, %c0_18, %c0_19, %c0_20] : memref<1x4x8x32xf32, #tpu.memory_space<vmem>>, vector<1x1x8x32xf32>
    %38 = vector.shape_cast %37 : vector<1x1x8x32xf32> to vector<8x32xf32>
    %39 = vector.broadcast %36 : vector<1x1xf32> to vector<8x32xf32>
    %40 = arith.mulf %39, %38 : vector<8x32xf32>
    %41 = arith.addf %35, %40 : vector<8x32xf32>
    %42 = vector.extract_strided_slice %0 {offsets = [1, 1], sizes = [1, 1], strides = [1, 1]} : vector<4x4xf32> to vector<1x1xf32>
    %c0_21 = arith.constant 0 : index
    %c1_22 = arith.constant 1 : index
    %c0_23 = arith.constant 0 : index
    %c0_24 = arith.constant 0 : index
    %43 = vector.load %arg1[%c0_21, %c1_22, %c0_23, %c0_24] : memref<1x4x8x32xf32, #tpu.memory_space<vmem>>, vector<1x1x8x32xf32>
    %44 = vector.shape_cast %43 : vector<1x1x8x32xf32> to vector<8x32xf32>
    %45 = vector.broadcast %42 : vector<1x1xf32> to vector<8x32xf32>
    %46 = arith.mulf %45, %44 : vector<8x32xf32>
    %47 = arith.addf %41, %46 : vector<8x32xf32>
    %48 = vector.extract_strided_slice %0 {offsets = [1, 2], sizes = [1, 1], strides = [1, 1]} : vector<4x4xf32> to vector<1x1xf32>
    %c0_25 = arith.constant 0 : index
    %c2_26 = arith.constant 2 : index
    %c0_27 = arith.constant 0 : index
    %c0_28 = arith.constant 0 : index
    %49 = vector.load %arg1[%c0_25, %c2_26, %c0_27, %c0_28] : memref<1x4x8x32xf32, #tpu.memory_space<vmem>>, vector<1x1x8x32xf32>
    %50 = vector.shape_cast %49 : vector<1x1x8x32xf32> to vector<8x32xf32>
    %51 = vector.broadcast %48 : vector<1x1xf32> to vector<8x32xf32>
    %52 = arith.mulf %51, %50 : vector<8x32xf32>
    %53 = arith.addf %47, %52 : vector<8x32xf32>
    %54 = vector.extract_strided_slice %0 {offsets = [1, 3], sizes = [1, 1], strides = [1, 1]} : vector<4x4xf32> to vector<1x1xf32>
    %c0_29 = arith.constant 0 : index
    %c3_30 = arith.constant 3 : index
    %c0_31 = arith.constant 0 : index
    %c0_32 = arith.constant 0 : index
    %55 = vector.load %arg1[%c0_29, %c3_30, %c0_31, %c0_32] : memref<1x4x8x32xf32, #tpu.memory_space<vmem>>, vector<1x1x8x32xf32>
    %56 = vector.shape_cast %55 : vector<1x1x8x32xf32> to vector<8x32xf32>
    %57 = vector.broadcast %54 : vector<1x1xf32> to vector<8x32xf32>
    %58 = arith.mulf %57, %56 : vector<8x32xf32>
    %59 = arith.addf %53, %58 : vector<8x32xf32>
    %cst_33 = arith.constant 0.000000e+00 : f32
    %cst_34 = arith.constant 6.000000e+00 : f32
    %60 = vector.broadcast %cst_33 : f32 to vector<8x32xf32>
    %61 = arith.maximumf %60, %59 : vector<8x32xf32>
    %62 = vector.broadcast %cst_34 : f32 to vector<8x32xf32>
    %63 = arith.minimumf %62, %61 : vector<8x32xf32>
    %64 = vector.extract_strided_slice %1 {offsets = [2, 0], sizes = [1, 1], strides = [1, 1]} : vector<4x1xf32> to vector<1x1xf32>
    %65 = vector.shape_cast %64 : vector<1x1xf32> to vector<1x1xf32>
    %66 = vector.broadcast %65 : vector<1x1xf32> to vector<8x32xf32>
    %67 = vector.extract_strided_slice %0 {offsets = [2, 0], sizes = [1, 1], strides = [1, 1]} : vector<4x4xf32> to vector<1x1xf32>
    %c0_35 = arith.constant 0 : index
    %c0_36 = arith.constant 0 : index
    %c0_37 = arith.constant 0 : index
    %c0_38 = arith.constant 0 : index
    %68 = vector.load %arg1[%c0_35, %c0_36, %c0_37, %c0_38] : memref<1x4x8x32xf32, #tpu.memory_space<vmem>>, vector<1x1x8x32xf32>
    %69 = vector.shape_cast %68 : vector<1x1x8x32xf32> to vector<8x32xf32>
    %70 = vector.broadcast %67 : vector<1x1xf32> to vector<8x32xf32>
    %71 = arith.mulf %70, %69 : vector<8x32xf32>
    %72 = arith.addf %66, %71 : vector<8x32xf32>
    %73 = vector.extract_strided_slice %0 {offsets = [2, 1], sizes = [1, 1], strides = [1, 1]} : vector<4x4xf32> to vector<1x1xf32>
    %c0_39 = arith.constant 0 : index
    %c1_40 = arith.constant 1 : index
    %c0_41 = arith.constant 0 : index
    %c0_42 = arith.constant 0 : index
    %74 = vector.load %arg1[%c0_39, %c1_40, %c0_41, %c0_42] : memref<1x4x8x32xf32, #tpu.memory_space<vmem>>, vector<1x1x8x32xf32>
    %75 = vector.shape_cast %74 : vector<1x1x8x32xf32> to vector<8x32xf32>
    %76 = vector.broadcast %73 : vector<1x1xf32> to vector<8x32xf32>
    %77 = arith.mulf %76, %75 : vector<8x32xf32>
    %78 = arith.addf %72, %77 : vector<8x32xf32>
    %79 = vector.extract_strided_slice %0 {offsets = [2, 2], sizes = [1, 1], strides = [1, 1]} : vector<4x4xf32> to vector<1x1xf32>
    %c0_43 = arith.constant 0 : index
    %c2_44 = arith.constant 2 : index
    %c0_45 = arith.constant 0 : index
    %c0_46 = arith.constant 0 : index
    %80 = vector.load %arg1[%c0_43, %c2_44, %c0_45, %c0_46] : memref<1x4x8x32xf32, #tpu.memory_space<vmem>>, vector<1x1x8x32xf32>
    %81 = vector.shape_cast %80 : vector<1x1x8x32xf32> to vector<8x32xf32>
    %82 = vector.broadcast %79 : vector<1x1xf32> to vector<8x32xf32>
    %83 = arith.mulf %82, %81 : vector<8x32xf32>
    %84 = arith.addf %78, %83 : vector<8x32xf32>
    %85 = vector.extract_strided_slice %0 {offsets = [2, 3], sizes = [1, 1], strides = [1, 1]} : vector<4x4xf32> to vector<1x1xf32>
    %c0_47 = arith.constant 0 : index
    %c3_48 = arith.constant 3 : index
    %c0_49 = arith.constant 0 : index
    %c0_50 = arith.constant 0 : index
    %86 = vector.load %arg1[%c0_47, %c3_48, %c0_49, %c0_50] : memref<1x4x8x32xf32, #tpu.memory_space<vmem>>, vector<1x1x8x32xf32>
    %87 = vector.shape_cast %86 : vector<1x1x8x32xf32> to vector<8x32xf32>
    %88 = vector.broadcast %85 : vector<1x1xf32> to vector<8x32xf32>
    %89 = arith.mulf %88, %87 : vector<8x32xf32>
    %90 = arith.addf %84, %89 : vector<8x32xf32>
    %cst_51 = arith.constant 0.000000e+00 : f32
    %cst_52 = arith.constant 6.000000e+00 : f32
    %91 = vector.broadcast %cst_51 : f32 to vector<8x32xf32>
    %92 = arith.maximumf %91, %90 : vector<8x32xf32>
    %93 = vector.broadcast %cst_52 : f32 to vector<8x32xf32>
    %94 = arith.minimumf %93, %92 : vector<8x32xf32>
    %95 = vector.extract_strided_slice %1 {offsets = [3, 0], sizes = [1, 1], strides = [1, 1]} : vector<4x1xf32> to vector<1x1xf32>
    %96 = vector.shape_cast %95 : vector<1x1xf32> to vector<1x1xf32>
    %97 = vector.broadcast %96 : vector<1x1xf32> to vector<8x32xf32>
    %98 = vector.extract_strided_slice %0 {offsets = [3, 0], sizes = [1, 1], strides = [1, 1]} : vector<4x4xf32> to vector<1x1xf32>
    %c0_53 = arith.constant 0 : index
    %c0_54 = arith.constant 0 : index
    %c0_55 = arith.constant 0 : index
    %c0_56 = arith.constant 0 : index
    %99 = vector.load %arg1[%c0_53, %c0_54, %c0_55, %c0_56] : memref<1x4x8x32xf32, #tpu.memory_space<vmem>>, vector<1x1x8x32xf32>
    %100 = vector.shape_cast %99 : vector<1x1x8x32xf32> to vector<8x32xf32>
    %101 = vector.broadcast %98 : vector<1x1xf32> to vector<8x32xf32>
    %102 = arith.mulf %101, %100 : vector<8x32xf32>
    %103 = arith.addf %97, %102 : vector<8x32xf32>
    %104 = vector.extract_strided_slice %0 {offsets = [3, 1], sizes = [1, 1], strides = [1, 1]} : vector<4x4xf32> to vector<1x1xf32>
    %c0_57 = arith.constant 0 : index
    %c1_58 = arith.constant 1 : index
    %c0_59 = arith.constant 0 : index
    %c0_60 = arith.constant 0 : index
    %105 = vector.load %arg1[%c0_57, %c1_58, %c0_59, %c0_60] : memref<1x4x8x32xf32, #tpu.memory_space<vmem>>, vector<1x1x8x32xf32>
    %106 = vector.shape_cast %105 : vector<1x1x8x32xf32> to vector<8x32xf32>
    %107 = vector.broadcast %104 : vector<1x1xf32> to vector<8x32xf32>
    %108 = arith.mulf %107, %106 : vector<8x32xf32>
    %109 = arith.addf %103, %108 : vector<8x32xf32>
    %110 = vector.extract_strided_slice %0 {offsets = [3, 2], sizes = [1, 1], strides = [1, 1]} : vector<4x4xf32> to vector<1x1xf32>
    %c0_61 = arith.constant 0 : index
    %c2_62 = arith.constant 2 : index
    %c0_63 = arith.constant 0 : index
    %c0_64 = arith.constant 0 : index
    %111 = vector.load %arg1[%c0_61, %c2_62, %c0_63, %c0_64] : memref<1x4x8x32xf32, #tpu.memory_space<vmem>>, vector<1x1x8x32xf32>
    %112 = vector.shape_cast %111 : vector<1x1x8x32xf32> to vector<8x32xf32>
    %113 = vector.broadcast %110 : vector<1x1xf32> to vector<8x32xf32>
    %114 = arith.mulf %113, %112 : vector<8x32xf32>
    %115 = arith.addf %109, %114 : vector<8x32xf32>
    %116 = vector.extract_strided_slice %0 {offsets = [3, 3], sizes = [1, 1], strides = [1, 1]} : vector<4x4xf32> to vector<1x1xf32>
    %c0_65 = arith.constant 0 : index
    %c3_66 = arith.constant 3 : index
    %c0_67 = arith.constant 0 : index
    %c0_68 = arith.constant 0 : index
    %117 = vector.load %arg1[%c0_65, %c3_66, %c0_67, %c0_68] : memref<1x4x8x32xf32, #tpu.memory_space<vmem>>, vector<1x1x8x32xf32>
    %118 = vector.shape_cast %117 : vector<1x1x8x32xf32> to vector<8x32xf32>
    %119 = vector.broadcast %116 : vector<1x1xf32> to vector<8x32xf32>
    %120 = arith.mulf %119, %118 : vector<8x32xf32>
    %121 = arith.addf %115, %120 : vector<8x32xf32>
    %cst_69 = arith.constant 0.000000e+00 : f32
    %cst_70 = arith.constant 6.000000e+00 : f32
    %122 = vector.broadcast %cst_69 : f32 to vector<8x32xf32>
    %123 = arith.maximumf %122, %121 : vector<8x32xf32>
    %124 = vector.broadcast %cst_70 : f32 to vector<8x32xf32>
    %125 = arith.minimumf %124, %123 : vector<8x32xf32>
    %126 = tpu.concatenate %32, %63, %94, %125 in 0 : vector<8x32xf32>, vector<8x32xf32>, vector<8x32xf32>, vector<8x32xf32> -> vector<32x32xf32>
    %c0_71 = arith.constant 0 : index
    %c0_72 = arith.constant 0 : index
    %127 = vector.load %arg2[%c0_71, %c0_72] : memref<32x48xf32, #tpu.memory_space<vmem>>, vector<32x48xf32>
    %cst_73 = arith.constant dense<0.000000e+00> : vector<32x48xf32>
    %128 = tpu.matmul %126, %127, %cst_73 {dimension_numbers = #tpu.dot_dimension_numbers<[1], [0], [0], [1], [0, 0, 1, 1], [], []>} : vector<32x32xf32>, vector<32x48xf32>, vector<32x48xf32> -> vector<32x48xf32>
    %129 = vector.extract_strided_slice %128 {offsets = [0, 0], sizes = [32, 24], strides = [1, 1]} : vector<32x48xf32> to vector<32x24xf32>
    %130 = vector.extract_strided_slice %128 {offsets = [0, 24], sizes = [32, 24], strides = [1, 1]} : vector<32x48xf32> to vector<32x24xf32>
    %c1_i32 = arith.constant 1 : i32
    %131 = tpu.dynamic_rotate %130 by %c1_i32 dim 0 : vector<32x24xf32>, i32 -> vector<32x24xf32>
    %c0_74 = arith.constant 0 : index
    %c0_75 = arith.constant 0 : index
    %132 = vector.load %arg3[%c0_74, %c0_75] : memref<32x9xf32, #tpu.memory_space<vmem>>, vector<32x9xf32>
    %cst_76 = arith.constant 0.000000e+00 : f32
    %133 = vector.broadcast %cst_76 : f32 to vector<32x8xf32>
    %134 = vector.extract_strided_slice %132 {offsets = [0, 0], sizes = [32, 1], strides = [1, 1]} : vector<32x9xf32> to vector<32x1xf32>
    %135 = vector.extract_strided_slice %131 {offsets = [0, 0], sizes = [32, 8], strides = [1, 1]} : vector<32x24xf32> to vector<32x8xf32>
    %136 = vector.broadcast %134 : vector<32x1xf32> to vector<32x8xf32>
    %137 = arith.mulf %136, %135 : vector<32x8xf32>
    %138 = arith.addf %133, %137 : vector<32x8xf32>
    %139 = vector.extract_strided_slice %132 {offsets = [0, 3], sizes = [32, 1], strides = [1, 1]} : vector<32x9xf32> to vector<32x1xf32>
    %140 = vector.extract_strided_slice %129 {offsets = [0, 0], sizes = [32, 8], strides = [1, 1]} : vector<32x24xf32> to vector<32x8xf32>
    %141 = vector.broadcast %139 : vector<32x1xf32> to vector<32x8xf32>
    %142 = arith.mulf %141, %140 : vector<32x8xf32>
    %143 = arith.addf %138, %142 : vector<32x8xf32>
    %144 = vector.extract_strided_slice %132 {offsets = [0, 6], sizes = [32, 1], strides = [1, 1]} : vector<32x9xf32> to vector<32x1xf32>
    %145 = vector.extract_strided_slice %130 {offsets = [0, 0], sizes = [32, 8], strides = [1, 1]} : vector<32x24xf32> to vector<32x8xf32>
    %146 = vector.broadcast %144 : vector<32x1xf32> to vector<32x8xf32>
    %147 = arith.mulf %146, %145 : vector<32x8xf32>
    %148 = arith.addf %143, %147 : vector<32x8xf32>
    %149 = vector.extract_strided_slice %132 {offsets = [0, 1], sizes = [32, 1], strides = [1, 1]} : vector<32x9xf32> to vector<32x1xf32>
    %150 = vector.extract_strided_slice %131 {offsets = [0, 8], sizes = [32, 8], strides = [1, 1]} : vector<32x24xf32> to vector<32x8xf32>
    %151 = vector.broadcast %149 : vector<32x1xf32> to vector<32x8xf32>
    %152 = arith.mulf %151, %150 : vector<32x8xf32>
    %153 = arith.addf %148, %152 : vector<32x8xf32>
    %154 = vector.extract_strided_slice %132 {offsets = [0, 4], sizes = [32, 1], strides = [1, 1]} : vector<32x9xf32> to vector<32x1xf32>
    %155 = vector.extract_strided_slice %129 {offsets = [0, 8], sizes = [32, 8], strides = [1, 1]} : vector<32x24xf32> to vector<32x8xf32>
    %156 = vector.broadcast %154 : vector<32x1xf32> to vector<32x8xf32>
    %157 = arith.mulf %156, %155 : vector<32x8xf32>
    %158 = arith.addf %153, %157 : vector<32x8xf32>
    %159 = vector.extract_strided_slice %132 {offsets = [0, 7], sizes = [32, 1], strides = [1, 1]} : vector<32x9xf32> to vector<32x1xf32>
    %160 = vector.extract_strided_slice %130 {offsets = [0, 8], sizes = [32, 8], strides = [1, 1]} : vector<32x24xf32> to vector<32x8xf32>
    %161 = vector.broadcast %159 : vector<32x1xf32> to vector<32x8xf32>
    %162 = arith.mulf %161, %160 : vector<32x8xf32>
    %163 = arith.addf %158, %162 : vector<32x8xf32>
    %164 = vector.extract_strided_slice %132 {offsets = [0, 2], sizes = [32, 1], strides = [1, 1]} : vector<32x9xf32> to vector<32x1xf32>
    %165 = vector.extract_strided_slice %131 {offsets = [0, 16], sizes = [32, 8], strides = [1, 1]} : vector<32x24xf32> to vector<32x8xf32>
    %166 = vector.broadcast %164 : vector<32x1xf32> to vector<32x8xf32>
    %167 = arith.mulf %166, %165 : vector<32x8xf32>
    %168 = arith.addf %163, %167 : vector<32x8xf32>
    %169 = vector.extract_strided_slice %132 {offsets = [0, 5], sizes = [32, 1], strides = [1, 1]} : vector<32x9xf32> to vector<32x1xf32>
    %170 = vector.extract_strided_slice %129 {offsets = [0, 16], sizes = [32, 8], strides = [1, 1]} : vector<32x24xf32> to vector<32x8xf32>
    %171 = vector.broadcast %169 : vector<32x1xf32> to vector<32x8xf32>
    %172 = arith.mulf %171, %170 : vector<32x8xf32>
    %173 = arith.addf %168, %172 : vector<32x8xf32>
    %174 = vector.extract_strided_slice %132 {offsets = [0, 8], sizes = [32, 1], strides = [1, 1]} : vector<32x9xf32> to vector<32x1xf32>
    %175 = vector.extract_strided_slice %130 {offsets = [0, 16], sizes = [32, 8], strides = [1, 1]} : vector<32x24xf32> to vector<32x8xf32>
    %176 = vector.broadcast %174 : vector<32x1xf32> to vector<32x8xf32>
    %177 = arith.mulf %176, %175 : vector<32x8xf32>
    %178 = arith.addf %173, %177 : vector<32x8xf32>
    %c0_77 = arith.constant 0 : index
    %c0_78 = arith.constant 0 : index
    %179 = vector.load %arg4[%c0_77, %c0_78] : memref<32x1xf32, #tpu.memory_space<vmem>>, vector<32x1xf32>
    %180 = vector.broadcast %179 : vector<32x1xf32> to vector<32x8xf32>
    %181 = arith.addf %178, %180 : vector<32x8xf32>
    %cst_79 = arith.constant 0.000000e+00 : f32
    %cst_80 = arith.constant 6.000000e+00 : f32
    %182 = vector.broadcast %cst_79 : f32 to vector<32x8xf32>
    %183 = arith.maximumf %182, %181 : vector<32x8xf32>
    %184 = vector.broadcast %cst_80 : f32 to vector<32x8xf32>
    %185 = arith.minimumf %184, %183 : vector<32x8xf32>
    %c0_81 = arith.constant 0 : index
    %c0_82 = arith.constant 0 : index
    %186 = vector.load %arg7[%c0_81, %c0_82] : memref<8x4xf32, #tpu.memory_space<vmem>>, vector<8x4xf32>
    %c0_83 = arith.constant 0 : index
    %c0_84 = arith.constant 0 : index
    %187 = vector.load %arg8[%c0_83, %c0_84] : memref<8x1xf32, #tpu.memory_space<vmem>>, vector<8x1xf32>
    %188 = vector.extract_strided_slice %187 {offsets = [0, 0], sizes = [1, 1], strides = [1, 1]} : vector<8x1xf32> to vector<1x1xf32>
    %189 = vector.shape_cast %188 : vector<1x1xf32> to vector<1x1xf32>
    %190 = vector.broadcast %189 : vector<1x1xf32> to vector<8x8xf32>
    %191 = vector.extract_strided_slice %186 {offsets = [0, 0], sizes = [1, 1], strides = [1, 1]} : vector<8x4xf32> to vector<1x1xf32>
    %192 = vector.extract_strided_slice %185 {offsets = [0, 0], sizes = [8, 8], strides = [1, 1]} : vector<32x8xf32> to vector<8x8xf32>
    %193 = vector.broadcast %191 : vector<1x1xf32> to vector<8x8xf32>
    %194 = arith.mulf %193, %192 : vector<8x8xf32>
    %195 = arith.addf %190, %194 : vector<8x8xf32>
    %196 = vector.extract_strided_slice %186 {offsets = [0, 1], sizes = [1, 1], strides = [1, 1]} : vector<8x4xf32> to vector<1x1xf32>
    %197 = vector.extract_strided_slice %185 {offsets = [8, 0], sizes = [8, 8], strides = [1, 1]} : vector<32x8xf32> to vector<8x8xf32>
    %198 = vector.broadcast %196 : vector<1x1xf32> to vector<8x8xf32>
    %199 = arith.mulf %198, %197 : vector<8x8xf32>
    %200 = arith.addf %195, %199 : vector<8x8xf32>
    %201 = vector.extract_strided_slice %186 {offsets = [0, 2], sizes = [1, 1], strides = [1, 1]} : vector<8x4xf32> to vector<1x1xf32>
    %202 = vector.extract_strided_slice %185 {offsets = [16, 0], sizes = [8, 8], strides = [1, 1]} : vector<32x8xf32> to vector<8x8xf32>
    %203 = vector.broadcast %201 : vector<1x1xf32> to vector<8x8xf32>
    %204 = arith.mulf %203, %202 : vector<8x8xf32>
    %205 = arith.addf %200, %204 : vector<8x8xf32>
    %206 = vector.extract_strided_slice %186 {offsets = [0, 3], sizes = [1, 1], strides = [1, 1]} : vector<8x4xf32> to vector<1x1xf32>
    %207 = vector.extract_strided_slice %185 {offsets = [24, 0], sizes = [8, 8], strides = [1, 1]} : vector<32x8xf32> to vector<8x8xf32>
    %208 = vector.broadcast %206 : vector<1x1xf32> to vector<8x8xf32>
    %209 = arith.mulf %208, %207 : vector<8x8xf32>
    %210 = arith.addf %205, %209 : vector<8x8xf32>
    %211 = vector.extract_strided_slice %187 {offsets = [1, 0], sizes = [1, 1], strides = [1, 1]} : vector<8x1xf32> to vector<1x1xf32>
    %212 = vector.shape_cast %211 : vector<1x1xf32> to vector<1x1xf32>
    %213 = vector.broadcast %212 : vector<1x1xf32> to vector<8x8xf32>
    %214 = vector.extract_strided_slice %186 {offsets = [1, 0], sizes = [1, 1], strides = [1, 1]} : vector<8x4xf32> to vector<1x1xf32>
    %215 = vector.extract_strided_slice %185 {offsets = [0, 0], sizes = [8, 8], strides = [1, 1]} : vector<32x8xf32> to vector<8x8xf32>
    %216 = vector.broadcast %214 : vector<1x1xf32> to vector<8x8xf32>
    %217 = arith.mulf %216, %215 : vector<8x8xf32>
    %218 = arith.addf %213, %217 : vector<8x8xf32>
    %219 = vector.extract_strided_slice %186 {offsets = [1, 1], sizes = [1, 1], strides = [1, 1]} : vector<8x4xf32> to vector<1x1xf32>
    %220 = vector.extract_strided_slice %185 {offsets = [8, 0], sizes = [8, 8], strides = [1, 1]} : vector<32x8xf32> to vector<8x8xf32>
    %221 = vector.broadcast %219 : vector<1x1xf32> to vector<8x8xf32>
    %222 = arith.mulf %221, %220 : vector<8x8xf32>
    %223 = arith.addf %218, %222 : vector<8x8xf32>
    %224 = vector.extract_strided_slice %186 {offsets = [1, 2], sizes = [1, 1], strides = [1, 1]} : vector<8x4xf32> to vector<1x1xf32>
    %225 = vector.extract_strided_slice %185 {offsets = [16, 0], sizes = [8, 8], strides = [1, 1]} : vector<32x8xf32> to vector<8x8xf32>
    %226 = vector.broadcast %224 : vector<1x1xf32> to vector<8x8xf32>
    %227 = arith.mulf %226, %225 : vector<8x8xf32>
    %228 = arith.addf %223, %227 : vector<8x8xf32>
    %229 = vector.extract_strided_slice %186 {offsets = [1, 3], sizes = [1, 1], strides = [1, 1]} : vector<8x4xf32> to vector<1x1xf32>
    %230 = vector.extract_strided_slice %185 {offsets = [24, 0], sizes = [8, 8], strides = [1, 1]} : vector<32x8xf32> to vector<8x8xf32>
    %231 = vector.broadcast %229 : vector<1x1xf32> to vector<8x8xf32>
    %232 = arith.mulf %231, %230 : vector<8x8xf32>
    %233 = arith.addf %228, %232 : vector<8x8xf32>
    %234 = vector.extract_strided_slice %187 {offsets = [2, 0], sizes = [1, 1], strides = [1, 1]} : vector<8x1xf32> to vector<1x1xf32>
    %235 = vector.shape_cast %234 : vector<1x1xf32> to vector<1x1xf32>
    %236 = vector.broadcast %235 : vector<1x1xf32> to vector<8x8xf32>
    %237 = vector.extract_strided_slice %186 {offsets = [2, 0], sizes = [1, 1], strides = [1, 1]} : vector<8x4xf32> to vector<1x1xf32>
    %238 = vector.extract_strided_slice %185 {offsets = [0, 0], sizes = [8, 8], strides = [1, 1]} : vector<32x8xf32> to vector<8x8xf32>
    %239 = vector.broadcast %237 : vector<1x1xf32> to vector<8x8xf32>
    %240 = arith.mulf %239, %238 : vector<8x8xf32>
    %241 = arith.addf %236, %240 : vector<8x8xf32>
    %242 = vector.extract_strided_slice %186 {offsets = [2, 1], sizes = [1, 1], strides = [1, 1]} : vector<8x4xf32> to vector<1x1xf32>
    %243 = vector.extract_strided_slice %185 {offsets = [8, 0], sizes = [8, 8], strides = [1, 1]} : vector<32x8xf32> to vector<8x8xf32>
    %244 = vector.broadcast %242 : vector<1x1xf32> to vector<8x8xf32>
    %245 = arith.mulf %244, %243 : vector<8x8xf32>
    %246 = arith.addf %241, %245 : vector<8x8xf32>
    %247 = vector.extract_strided_slice %186 {offsets = [2, 2], sizes = [1, 1], strides = [1, 1]} : vector<8x4xf32> to vector<1x1xf32>
    %248 = vector.extract_strided_slice %185 {offsets = [16, 0], sizes = [8, 8], strides = [1, 1]} : vector<32x8xf32> to vector<8x8xf32>
    %249 = vector.broadcast %247 : vector<1x1xf32> to vector<8x8xf32>
    %250 = arith.mulf %249, %248 : vector<8x8xf32>
    %251 = arith.addf %246, %250 : vector<8x8xf32>
    %252 = vector.extract_strided_slice %186 {offsets = [2, 3], sizes = [1, 1], strides = [1, 1]} : vector<8x4xf32> to vector<1x1xf32>
    %253 = vector.extract_strided_slice %185 {offsets = [24, 0], sizes = [8, 8], strides = [1, 1]} : vector<32x8xf32> to vector<8x8xf32>
    %254 = vector.broadcast %252 : vector<1x1xf32> to vector<8x8xf32>
    %255 = arith.mulf %254, %253 : vector<8x8xf32>
    %256 = arith.addf %251, %255 : vector<8x8xf32>
    %257 = vector.extract_strided_slice %187 {offsets = [3, 0], sizes = [1, 1], strides = [1, 1]} : vector<8x1xf32> to vector<1x1xf32>
    %258 = vector.shape_cast %257 : vector<1x1xf32> to vector<1x1xf32>
    %259 = vector.broadcast %258 : vector<1x1xf32> to vector<8x8xf32>
    %260 = vector.extract_strided_slice %186 {offsets = [3, 0], sizes = [1, 1], strides = [1, 1]} : vector<8x4xf32> to vector<1x1xf32>
    %261 = vector.extract_strided_slice %185 {offsets = [0, 0], sizes = [8, 8], strides = [1, 1]} : vector<32x8xf32> to vector<8x8xf32>
    %262 = vector.broadcast %260 : vector<1x1xf32> to vector<8x8xf32>
    %263 = arith.mulf %262, %261 : vector<8x8xf32>
    %264 = arith.addf %259, %263 : vector<8x8xf32>
    %265 = vector.extract_strided_slice %186 {offsets = [3, 1], sizes = [1, 1], strides = [1, 1]} : vector<8x4xf32> to vector<1x1xf32>
    %266 = vector.extract_strided_slice %185 {offsets = [8, 0], sizes = [8, 8], strides = [1, 1]} : vector<32x8xf32> to vector<8x8xf32>
    %267 = vector.broadcast %265 : vector<1x1xf32> to vector<8x8xf32>
    %268 = arith.mulf %267, %266 : vector<8x8xf32>
    %269 = arith.addf %264, %268 : vector<8x8xf32>
    %270 = vector.extract_strided_slice %186 {offsets = [3, 2], sizes = [1, 1], strides = [1, 1]} : vector<8x4xf32> to vector<1x1xf32>
    %271 = vector.extract_strided_slice %185 {offsets = [16, 0], sizes = [8, 8], strides = [1, 1]} : vector<32x8xf32> to vector<8x8xf32>
    %272 = vector.broadcast %270 : vector<1x1xf32> to vector<8x8xf32>
    %273 = arith.mulf %272, %271 : vector<8x8xf32>
    %274 = arith.addf %269, %273 : vector<8x8xf32>
    %275 = vector.extract_strided_slice %186 {offsets = [3, 3], sizes = [1, 1], strides = [1, 1]} : vector<8x4xf32> to vector<1x1xf32>
    %276 = vector.extract_strided_slice %185 {offsets = [24, 0], sizes = [8, 8], strides = [1, 1]} : vector<32x8xf32> to vector<8x8xf32>
    %277 = vector.broadcast %275 : vector<1x1xf32> to vector<8x8xf32>
    %278 = arith.mulf %277, %276 : vector<8x8xf32>
    %279 = arith.addf %274, %278 : vector<8x8xf32>
    %280 = vector.extract_strided_slice %187 {offsets = [4, 0], sizes = [1, 1], strides = [1, 1]} : vector<8x1xf32> to vector<1x1xf32>
    %281 = vector.shape_cast %280 : vector<1x1xf32> to vector<1x1xf32>
    %282 = vector.broadcast %281 : vector<1x1xf32> to vector<8x8xf32>
    %283 = vector.extract_strided_slice %186 {offsets = [4, 0], sizes = [1, 1], strides = [1, 1]} : vector<8x4xf32> to vector<1x1xf32>
    %284 = vector.extract_strided_slice %185 {offsets = [0, 0], sizes = [8, 8], strides = [1, 1]} : vector<32x8xf32> to vector<8x8xf32>
    %285 = vector.broadcast %283 : vector<1x1xf32> to vector<8x8xf32>
    %286 = arith.mulf %285, %284 : vector<8x8xf32>
    %287 = arith.addf %282, %286 : vector<8x8xf32>
    %288 = vector.extract_strided_slice %186 {offsets = [4, 1], sizes = [1, 1], strides = [1, 1]} : vector<8x4xf32> to vector<1x1xf32>
    %289 = vector.extract_strided_slice %185 {offsets = [8, 0], sizes = [8, 8], strides = [1, 1]} : vector<32x8xf32> to vector<8x8xf32>
    %290 = vector.broadcast %288 : vector<1x1xf32> to vector<8x8xf32>
    %291 = arith.mulf %290, %289 : vector<8x8xf32>
    %292 = arith.addf %287, %291 : vector<8x8xf32>
    %293 = vector.extract_strided_slice %186 {offsets = [4, 2], sizes = [1, 1], strides = [1, 1]} : vector<8x4xf32> to vector<1x1xf32>
    %294 = vector.extract_strided_slice %185 {offsets = [16, 0], sizes = [8, 8], strides = [1, 1]} : vector<32x8xf32> to vector<8x8xf32>
    %295 = vector.broadcast %293 : vector<1x1xf32> to vector<8x8xf32>
    %296 = arith.mulf %295, %294 : vector<8x8xf32>
    %297 = arith.addf %292, %296 : vector<8x8xf32>
    %298 = vector.extract_strided_slice %186 {offsets = [4, 3], sizes = [1, 1], strides = [1, 1]} : vector<8x4xf32> to vector<1x1xf32>
    %299 = vector.extract_strided_slice %185 {offsets = [24, 0], sizes = [8, 8], strides = [1, 1]} : vector<32x8xf32> to vector<8x8xf32>
    %300 = vector.broadcast %298 : vector<1x1xf32> to vector<8x8xf32>
    %301 = arith.mulf %300, %299 : vector<8x8xf32>
    %302 = arith.addf %297, %301 : vector<8x8xf32>
    %303 = vector.extract_strided_slice %187 {offsets = [5, 0], sizes = [1, 1], strides = [1, 1]} : vector<8x1xf32> to vector<1x1xf32>
    %304 = vector.shape_cast %303 : vector<1x1xf32> to vector<1x1xf32>
    %305 = vector.broadcast %304 : vector<1x1xf32> to vector<8x8xf32>
    %306 = vector.extract_strided_slice %186 {offsets = [5, 0], sizes = [1, 1], strides = [1, 1]} : vector<8x4xf32> to vector<1x1xf32>
    %307 = vector.extract_strided_slice %185 {offsets = [0, 0], sizes = [8, 8], strides = [1, 1]} : vector<32x8xf32> to vector<8x8xf32>
    %308 = vector.broadcast %306 : vector<1x1xf32> to vector<8x8xf32>
    %309 = arith.mulf %308, %307 : vector<8x8xf32>
    %310 = arith.addf %305, %309 : vector<8x8xf32>
    %311 = vector.extract_strided_slice %186 {offsets = [5, 1], sizes = [1, 1], strides = [1, 1]} : vector<8x4xf32> to vector<1x1xf32>
    %312 = vector.extract_strided_slice %185 {offsets = [8, 0], sizes = [8, 8], strides = [1, 1]} : vector<32x8xf32> to vector<8x8xf32>
    %313 = vector.broadcast %311 : vector<1x1xf32> to vector<8x8xf32>
    %314 = arith.mulf %313, %312 : vector<8x8xf32>
    %315 = arith.addf %310, %314 : vector<8x8xf32>
    %316 = vector.extract_strided_slice %186 {offsets = [5, 2], sizes = [1, 1], strides = [1, 1]} : vector<8x4xf32> to vector<1x1xf32>
    %317 = vector.extract_strided_slice %185 {offsets = [16, 0], sizes = [8, 8], strides = [1, 1]} : vector<32x8xf32> to vector<8x8xf32>
    %318 = vector.broadcast %316 : vector<1x1xf32> to vector<8x8xf32>
    %319 = arith.mulf %318, %317 : vector<8x8xf32>
    %320 = arith.addf %315, %319 : vector<8x8xf32>
    %321 = vector.extract_strided_slice %186 {offsets = [5, 3], sizes = [1, 1], strides = [1, 1]} : vector<8x4xf32> to vector<1x1xf32>
    %322 = vector.extract_strided_slice %185 {offsets = [24, 0], sizes = [8, 8], strides = [1, 1]} : vector<32x8xf32> to vector<8x8xf32>
    %323 = vector.broadcast %321 : vector<1x1xf32> to vector<8x8xf32>
    %324 = arith.mulf %323, %322 : vector<8x8xf32>
    %325 = arith.addf %320, %324 : vector<8x8xf32>
    %326 = vector.extract_strided_slice %187 {offsets = [6, 0], sizes = [1, 1], strides = [1, 1]} : vector<8x1xf32> to vector<1x1xf32>
    %327 = vector.shape_cast %326 : vector<1x1xf32> to vector<1x1xf32>
    %328 = vector.broadcast %327 : vector<1x1xf32> to vector<8x8xf32>
    %329 = vector.extract_strided_slice %186 {offsets = [6, 0], sizes = [1, 1], strides = [1, 1]} : vector<8x4xf32> to vector<1x1xf32>
    %330 = vector.extract_strided_slice %185 {offsets = [0, 0], sizes = [8, 8], strides = [1, 1]} : vector<32x8xf32> to vector<8x8xf32>
    %331 = vector.broadcast %329 : vector<1x1xf32> to vector<8x8xf32>
    %332 = arith.mulf %331, %330 : vector<8x8xf32>
    %333 = arith.addf %328, %332 : vector<8x8xf32>
    %334 = vector.extract_strided_slice %186 {offsets = [6, 1], sizes = [1, 1], strides = [1, 1]} : vector<8x4xf32> to vector<1x1xf32>
    %335 = vector.extract_strided_slice %185 {offsets = [8, 0], sizes = [8, 8], strides = [1, 1]} : vector<32x8xf32> to vector<8x8xf32>
    %336 = vector.broadcast %334 : vector<1x1xf32> to vector<8x8xf32>
    %337 = arith.mulf %336, %335 : vector<8x8xf32>
    %338 = arith.addf %333, %337 : vector<8x8xf32>
    %339 = vector.extract_strided_slice %186 {offsets = [6, 2], sizes = [1, 1], strides = [1, 1]} : vector<8x4xf32> to vector<1x1xf32>
    %340 = vector.extract_strided_slice %185 {offsets = [16, 0], sizes = [8, 8], strides = [1, 1]} : vector<32x8xf32> to vector<8x8xf32>
    %341 = vector.broadcast %339 : vector<1x1xf32> to vector<8x8xf32>
    %342 = arith.mulf %341, %340 : vector<8x8xf32>
    %343 = arith.addf %338, %342 : vector<8x8xf32>
    %344 = vector.extract_strided_slice %186 {offsets = [6, 3], sizes = [1, 1], strides = [1, 1]} : vector<8x4xf32> to vector<1x1xf32>
    %345 = vector.extract_strided_slice %185 {offsets = [24, 0], sizes = [8, 8], strides = [1, 1]} : vector<32x8xf32> to vector<8x8xf32>
    %346 = vector.broadcast %344 : vector<1x1xf32> to vector<8x8xf32>
    %347 = arith.mulf %346, %345 : vector<8x8xf32>
    %348 = arith.addf %343, %347 : vector<8x8xf32>
    %349 = vector.extract_strided_slice %187 {offsets = [7, 0], sizes = [1, 1], strides = [1, 1]} : vector<8x1xf32> to vector<1x1xf32>
    %350 = vector.shape_cast %349 : vector<1x1xf32> to vector<1x1xf32>
    %351 = vector.broadcast %350 : vector<1x1xf32> to vector<8x8xf32>
    %352 = vector.extract_strided_slice %186 {offsets = [7, 0], sizes = [1, 1], strides = [1, 1]} : vector<8x4xf32> to vector<1x1xf32>
    %353 = vector.extract_strided_slice %185 {offsets = [0, 0], sizes = [8, 8], strides = [1, 1]} : vector<32x8xf32> to vector<8x8xf32>
    %354 = vector.broadcast %352 : vector<1x1xf32> to vector<8x8xf32>
    %355 = arith.mulf %354, %353 : vector<8x8xf32>
    %356 = arith.addf %351, %355 : vector<8x8xf32>
    %357 = vector.extract_strided_slice %186 {offsets = [7, 1], sizes = [1, 1], strides = [1, 1]} : vector<8x4xf32> to vector<1x1xf32>
    %358 = vector.extract_strided_slice %185 {offsets = [8, 0], sizes = [8, 8], strides = [1, 1]} : vector<32x8xf32> to vector<8x8xf32>
    %359 = vector.broadcast %357 : vector<1x1xf32> to vector<8x8xf32>
    %360 = arith.mulf %359, %358 : vector<8x8xf32>
    %361 = arith.addf %356, %360 : vector<8x8xf32>
    %362 = vector.extract_strided_slice %186 {offsets = [7, 2], sizes = [1, 1], strides = [1, 1]} : vector<8x4xf32> to vector<1x1xf32>
    %363 = vector.extract_strided_slice %185 {offsets = [16, 0], sizes = [8, 8], strides = [1, 1]} : vector<32x8xf32> to vector<8x8xf32>
    %364 = vector.broadcast %362 : vector<1x1xf32> to vector<8x8xf32>
    %365 = arith.mulf %364, %363 : vector<8x8xf32>
    %366 = arith.addf %361, %365 : vector<8x8xf32>
    %367 = vector.extract_strided_slice %186 {offsets = [7, 3], sizes = [1, 1], strides = [1, 1]} : vector<8x4xf32> to vector<1x1xf32>
    %368 = vector.extract_strided_slice %185 {offsets = [24, 0], sizes = [8, 8], strides = [1, 1]} : vector<32x8xf32> to vector<8x8xf32>
    %369 = vector.broadcast %367 : vector<1x1xf32> to vector<8x8xf32>
    %370 = arith.mulf %369, %368 : vector<8x8xf32>
    %371 = arith.addf %366, %370 : vector<8x8xf32>
    %372 = tpu.concatenate %210, %233, %256, %279, %302, %325, %348, %371 in 0 : vector<8x8xf32>, vector<8x8xf32>, vector<8x8xf32>, vector<8x8xf32>, vector<8x8xf32>, vector<8x8xf32>, vector<8x8xf32>, vector<8x8xf32> -> vector<64x8xf32>
    %c0_85 = arith.constant 0 : index
    %c0_86 = arith.constant 0 : index
    %c0_87 = arith.constant 0 : index
    %373 = vector.load %arg9[%c0_85, %c0_86, %c0_87] : memref<1x64x8xf32, #tpu.memory_space<vmem>>, vector<1x64x8xf32>
    %374 = vector.shape_cast %373 : vector<1x64x8xf32> to vector<64x8xf32>
    %375 = vector.shape_cast %372 : vector<64x8xf32> to vector<1x64x8xf32>
    tpu.vector_store %arg9[%c0_85, %c0_86, %c0_87], %375 {strides = array<i32>} : memref<1x64x8xf32, #tpu.memory_space<vmem>>, vector<1x64x8xf32>,
    return
  }
  func.func @transform_0(%arg0: i32) -> (i32, i32, i32, i32) {
    %c0_i32 = arith.constant 0 : i32
    %c0_i32_0 = arith.constant 0 : i32
    %c0_i32_1 = arith.constant 0 : i32
    %c0_i32_2 = arith.constant 0 : i32
    return %arg0, %c0_i32, %c0_i32_0, %c0_i32_1 : i32, i32, i32, i32
  }
  func.func @transform_1(%arg0: i32) -> (i32, i32) {
    %c0_i32 = arith.constant 0 : i32
    %c0_i32_0 = arith.constant 0 : i32
    %c0_i32_1 = arith.constant 0 : i32
    return %c0_i32, %c0_i32_0 : i32, i32
  }
  func.func @transform_2(%arg0: i32) -> (i32, i32) {
    %c0_i32 = arith.constant 0 : i32
    %c0_i32_0 = arith.constant 0 : i32
    %c0_i32_1 = arith.constant 0 : i32
    return %c0_i32, %c0_i32_0 : i32, i32
  }
  func.func @transform_3(%arg0: i32) -> (i32, i32) {
    %c0_i32 = arith.constant 0 : i32
    %c0_i32_0 = arith.constant 0 : i32
    %c0_i32_1 = arith.constant 0 : i32
    return %c0_i32, %c0_i32_0 : i32, i32
  }
  func.func @transform_4(%arg0: i32) -> (i32, i32) {
    %c0_i32 = arith.constant 0 : i32
    %c0_i32_0 = arith.constant 0 : i32
    %c0_i32_1 = arith.constant 0 : i32
    return %c0_i32, %c0_i32_0 : i32, i32
  }
  func.func @transform_5(%arg0: i32) -> (i32, i32) {
    %c0_i32 = arith.constant 0 : i32
    %c0_i32_0 = arith.constant 0 : i32
    %c0_i32_1 = arith.constant 0 : i32
    return %c0_i32, %c0_i32_0 : i32, i32
  }
  func.func @transform_6(%arg0: i32) -> (i32, i32) {
    %c0_i32 = arith.constant 0 : i32
    %c0_i32_0 = arith.constant 0 : i32
    %c0_i32_1 = arith.constant 0 : i32
    return %c0_i32, %c0_i32_0 : i32, i32
  }
  func.func @transform_7(%arg0: i32) -> (i32, i32) {
    %c0_i32 = arith.constant 0 : i32
    %c0_i32_0 = arith.constant 0 : i32
    %c0_i32_1 = arith.constant 0 : i32
    return %c0_i32, %c0_i32_0 : i32, i32
  }
  func.func @transform_8(%arg0: i32) -> (i32, i32, i32) {
    %c0_i32 = arith.constant 0 : i32
    %c0_i32_0 = arith.constant 0 : i32
    %c0_i32_1 = arith.constant 0 : i32
    return %arg0, %c0_i32, %c0_i32_0 : i32, i32, i32
  }
}

</mosaic_0001>

<bundles_post_ra>
// kernel: tpu_custom_call.1
= control target key start
LH: loop header
LB: loop body
LE: loop exit
PB: predicated region body
PF: predicated region fallthrough
CT: control target
= control target key end

     0   :  { %s1551_s27 = smov 0   ;;  %s2177_s0 = inlined_call_operand.vmem [shape: f32[2,4,8,32], index: 0, kind: input, shape index: {}]   ;;  %s2178_s1 = inlined_call_operand.vmem [shape: f32[32,48], index: 1, kind: input, shape index: {}]   ;;  %s2179_s2 = inlined_call_operand.vmem [shape: f32[32,9], index: 2, kind: input, shape index: {}]   ;;  %s2180_s3 = inlined_call_operand.vmem [shape: f32[32,1], index: 3, kind: input, shape index: {}]   ;;  %s2181_s4 = inlined_call_operand.vmem [shape: f32[4,4], index: 4, kind: input, shape index: {}]   ;;  %s2182_s5 = inlined_call_operand.vmem [shape: f32[4,1], index: 5, kind: input, shape index: {}]   ;;  %s2183_s6 = inlined_call_operand.vmem [shape: f32[8,4], index: 6, kind: input, shape index: {}]   ;;  %s2184_s7 = inlined_call_operand.vmem [shape: f32[8,1], index: 7, kind: input, shape index: {}]   ;;  %s2185_s8 = inlined_call_operand.vmem [shape: f32[2,64,8], index: 8, kind: output, shape index: {}]  }
   0x1   :  { %2188 = sst [smem:[#allocation9_spill]] %s2177_s0 }
   0x2   :  { %2189 = sst [smem:[#allocation10_spill]] %s2178_s1 }
   0x3   :  { %2190 = sst [smem:[#allocation11_spill]] %s2179_s2 }
   0x4   :  { %2191 = sst [smem:[#allocation12_spill]] %s2180_s3 }
   0x5   :  { %2192 = sst [smem:[#allocation13_spill]] %s2181_s4 }
   0x6   :  { %2193 = sst [smem:[#allocation14_spill]] %s2182_s5 }
   0x7   :  { %2194 = sst [smem:[#allocation15_spill]] %s2183_s6 }
   0x8   :  { %2195 = sst [smem:[#allocation16_spill]] %s2184_s7 }
   0x9   :  { %2196 = sst [smem:[#allocation17_spill]] %s2185_s8 }
   0xa LB: > { %2197 = sst [smem:[#allocation2_spill]] %s1487_s27  ;;  %s1262_s28 = sadd.s32 4294967295, %s1487_s27   ;;  %s1487_s27 = sphi %s1551_s27, %s18_s27  }
   0xb   : > { %p1266_p0 = scmp.ge.s32.totalorder %s1487_s27, 1  ;;  %p262_p1 = scmp.lt.s32.totalorder %s1487_s27, 3 }
   0xd   : > { %p263_p2 = pnand %p1266_p0, %p262_p1 }
   0xf   : > { %266 = sbr.rel (%p263_p2) target bundleno = 718 (0x2ce), region = 52 }
  0x16   : > { %s2198_s4 = sld [smem:[#allocation13_spill]]  ;;  %s2199_s5 = sld [smem:[#allocation14_spill]]  ;;  %v1492_v11 = vmov 0   ;;  %v1493_v15 = vmov 3   ;;  %v1494_v16 = vmov 6   ;;  %v1495_v18 = vmov 1  }
  0x17   : > { %s1489_s11 = smov 127   ;;  %s1490_s12 = smov 125   ;;  %1461 = vset.pattern.permute.xlu1 %v1492_v11  ;;  %1463 = vset.pattern.permute.xlu0 %v1493_v15  ;;  %v1496_v19 = vmov 4   ;;  %v1497_v20 = vmov 7   ;;  %v1498_v21 = vmov 2   ;;  %v1499_v22 = vmov 8  }
  0x18   : > { %s1491_s13 = smov 126   ;;  %s2200_s1 = sld [smem:[#allocation10_spill]]  ;;  %v1500_v37 = vmov 5   ;;  %vm451_vm0 = vcmask 261120   ;;  %vm1198_vm2 = vcmask 64512  }
  0x19   : > { %s2201_s2 = sld [smem:[#allocation11_spill]]  ;;  %s2202_s6 = sld [smem:[#allocation15_spill]] }
  0x1a   : > { %p296_p3 = scmp.lt.s32.totalorder %s1262_s28, 1  ;;  %s2204_s0 = sld [smem:[#allocation9_spill]] }
  0x1b   : > { %s2205_s7 = sld [smem:[#allocation16_spill]]  ;;  %s2206_s3 = sld [smem:[#allocation12_spill]] }
  0x1c   : > { %v306_v0 = vld [vmem:[%s2198_s4] sm:$0xf]  ;;  %s2221_s28 = smov (!%p296_p3, %s1262_s28), 1 }
  0x1d   : > { %v1565_v1 = vld [vmem:[%s2199_s5] sm:$0xf]  ;;  %321 = vrot.lane.b32.xlu0 %v306_v0, %s1489_s11  ;;  %339 = vrot.lane.b32.xlu1 %v306_v0, %s1490_s12  ;;  %v1569_v2 = vrot.slane %v306_v0, 1  ;;  %v1579_v3 = vrot.slane %v306_v0, 2  ;;  %v1585_v4 = vrot.slane %v306_v0, 3  ;;  %2203 = sst [smem:[#allocation3_spill]] %s2221_s28 }
  0x1e   : > { %1316 = vpush %v1565_v1  ;;  %v447_v5 = vld [vmem:[%s2200_s1] sm:$0xff]  ;;  %v448_v6 = vld [vmem:[%s2200_s1 + $0x8] sm:$0xff]  ;;  %v449_v8 = vld [vmem:[%s2200_s1 + $0x10] sm:$0xff]  ;;  %v348_v25 = vrot.slane %v1565_v1, 1  ;;  %v381_v30 = vrot.slane %v1565_v1, 2  ;;  %v414_v33 = vrot.slane %v1565_v1, 3 }
  0x1f   : > { %1318 = vpush %v306_v0  ;;  %v1304_v7 = vpack.c.bf16 %v448_v6, %v447_v5  ;;  %v450_v9 = vld [vmem:[%s2200_s1 + $0x18] sm:$0xff]  ;;  %v1611_v12 = vld [vmem:[%s2201_s2 + $0x8] sm:$0xff]  ;;  %v1617_v13 = vld [vmem:[%s2201_s2 + $0x10] sm:$0xff]  ;;  %s1280_s15 = sshll.u32 %s2221_s28, 5 }
  0x20   : > { %v1308_v10 = vpack.c.bf16 %v450_v9, %v449_v8  ;;  %v1623_v14 = vld [vmem:[%s2201_s2] sm:$0xff]  ;;  %v1631_v17 = vld [vmem:[%s2201_s2 + $0x18] sm:$0xff]  ;;  %s300_s19 = scalar_lea.vmem %s2204_s0, %s1280_s15 }
  0x21   : > { %330 = vrot.lane.b32.xlu0 %v306_v0, %s1491_s13  ;;  %358 = vrot.lane.b32.xlu1 %v1569_v2, %s1489_s11  ;;  %v1668_v36 = vld [vmem:[%s2202_s6] sm:$0xff]  ;;  %v1722_v48 = vld [vmem:[%s300_s19 + $0x8] sm:$0xff] }
  0x22   : > { %1305 = vmatprep.subr.bf16.mxu0 %v1304_v7  ;;  %1312 = vmatprep.subr.bf16.mxu1 %v1304_v7  ;;  %v1678_v40 = vrot.slane %v1668_v36, 1  ;;  %v1684_v41 = vrot.slane %v1668_v36, 2  ;;  %v1699_v42 = vrot.slane %v1668_v36, 3  ;;  %v1705_v43 = vrot.slane %v1668_v36, 4  ;;  %v1714_v44 = vld [vmem:[%s300_s19] sm:$0xff]  ;;  %v1727_v52 = vld [vmem:[%s300_s19 + $0x10] sm:$0xff] }
  0x23   : > { %1307 = vmatpush3.bf16.msra.mxu0 %v1304_v7  ;;  %1314 = vmatpush3.bf16.msra.mxu1 %v1304_v7  ;;  %v1731_v54 = vld [vmem:[%s300_s19 + $0x18] sm:$0xff] }
  0x24   : > { %1309 = vmatprep.subr.bf16.mxu0 %v1308_v10  ;;  %1313 = vmatprep.subr.bf16.mxu1 %v1308_v10 }
  0x25   : > { %365 = vrot.lane.b32.xlu0 %v1569_v2, %s1491_s13  ;;  %372 = vrot.lane.b32.xlu1 %v1569_v2, %s1490_s12 }
  0x27   : > { %1311 = vmatpush3.bf16.msra.mxu0 %v1308_v10  ;;  %1315 = vmatpush3.bf16.msra.mxu1 %v1308_v10 }
  0x29   : > { %391 = vrot.lane.b32.xlu0 %v1579_v3, %s1489_s11  ;;  %398 = vrot.lane.b32.xlu1 %v1579_v3, %s1491_s13 }
  0x2d   : > { %405 = vrot.lane.b32.xlu0 %v1579_v3, %s1490_s12  ;;  %424 = vrot.lane.b32.xlu1 %v1585_v4, %s1489_s11 }
  0x31   : > { %431 = vrot.lane.b32.xlu0 %v1585_v4, %s1491_s13  ;;  %438 = vrot.lane.b32.xlu1 %v1585_v4, %s1490_s12 }
  0x35   : > { %587 = vperm.xlu1 %1461, %v1611_v12   ;;  %613 = vperm.xlu0 %1463, %v1611_v12  }
  0x39   : > { %592 = vperm.xlu1 %1461, %v1617_v13   ;;  %1464 = vset.pattern.permute.xlu0 %v1494_v16 }
  0x3a   : > { %633 = vperm.xlu0 %1464, %v1623_v14  }
  0x3d   : > { %1462 = vset.pattern.permute.xlu1 %v1493_v15 }
  0x3e   : > { %609 = vperm.xlu1 %1462, %v1623_v14   ;;  %645 = vperm.xlu0 %1464, %v1631_v17  }
  0x42   : > { %617 = vperm.xlu1 %1462, %v1617_v13   ;;  %1467 = vset.pattern.permute.xlu0 %v1495_v18 }
  0x43   : > { %677 = vperm.xlu0 %1467, %v1611_v12  }
  0x46   : > { %621 = vperm.xlu1 %1462, %v1631_v17  }
  0x47   : > { %1468 = vset.pattern.permute.xlu0 %v1496_v19 }
  0x48   : > { %713 = vperm.xlu0 %1468, %v1623_v14  }
  0x4a   : > { %1465 = vset.pattern.permute.xlu1 %v1494_v16 }
  0x4b   : > { %637 = vperm.xlu1 %1465, %v1611_v12  }
  0x4c   : > { %725 = vperm.xlu0 %1468, %v1631_v17  }
  0x4f   : > { %641 = vperm.xlu1 %1465, %v1617_v13   ;;  %s1317_s16 = spop %1316 }
  0x50   : > { %1471 = vset.pattern.permute.xlu0 %v1497_v20  ;;  %s1319_s20 = spop %1318  ;;  %v310_v47 = vstv %s1317_s16 }
  0x51   : > { %757 = vperm.xlu0 %1471, %v1611_v12   ;;  %v315_v45 = vstv %s1319_s20 }
  0x52   : > { %v317_v46 = vmul.f32 %v315_v45, %v1714_v44 }
  0x53   : > { %1466 = vset.pattern.permute.xlu1 %v1495_v18 }
  0x54   : > { %673 = vperm.xlu1 %1466, %v1623_v14   ;;  %v318_v50 = vadd.f32 %v317_v46, %v310_v47 }
  0x55   : > { %1472 = vset.pattern.permute.xlu0 %v1498_v21 }
  0x56   : > { %793 = vperm.xlu0 %1472, %v1623_v14  }
  0x58   : > { %681 = vperm.xlu1 %1466, %v1617_v13  }
  0x5a   : > { %801 = vperm.xlu0 %1472, %v1617_v13  }
  0x5c   : > { %685 = vperm.xlu1 %1466, %v1631_v17  }
  0x5e   : > { %1475 = vset.pattern.permute.xlu0 %v1499_v22 }
  0x5f   : > { %873 = vperm.xlu0 %1475, %v1623_v14  }
  0x60   : > { %1469 = vset.pattern.permute.xlu1 %v1496_v19 }
  0x61   : > { %717 = vperm.xlu1 %1469, %v1611_v12  }
  0x63   : > { %877 = vperm.xlu0 %1475, %v1611_v12  }
  0x65   : > { %721 = vperm.xlu1 %1469, %v1617_v13  }
  0x67   : > { %881 = vperm.xlu0 %1475, %v1617_v13  }
  0x69   : > { %1470 = vset.pattern.permute.xlu1 %v1497_v20 }
  0x6a   : > { %753 = vperm.xlu1 %1470, %v1623_v14  }
  0x6b   : > { %1478 = vset.pattern.permute.xlu0 %v1492_v11 }
  0x6c   : > { %582 = vperm.xlu0 %1478, %v1623_v14  }
  0x6e   : > { %761 = vperm.xlu1 %1470, %v1617_v13  }
  0x70   : > { %597 = vperm.xlu0 %1478, %v1631_v17  }
  0x72   : > { %765 = vperm.xlu1 %1470, %v1631_v17  }
  0x74   : > { %960 = vrot.lane.b32.xlu0 %v1668_v36, %s1489_s11 }
  0x76   : > { %1473 = vset.pattern.permute.xlu1 %v1498_v21 }
  0x77   : > { %797 = vperm.xlu1 %1473, %v1611_v12  }
  0x78   : > { %974 = vrot.lane.b32.xlu0 %v1668_v36, %s1490_s12 }
  0x7b   : > { %1474 = vset.pattern.permute.xlu1 %v1500_v37 }
  0x7c   : > { %833 = vperm.xlu1 %1474, %v1623_v14   ;;  %998 = vrot.lane.b32.xlu0 %v1678_v40, %s1491_s13 }
  0x80   : > { %837 = vperm.xlu1 %1474, %v1611_v12   ;;  %1022 = vrot.lane.b32.xlu0 %v1684_v41, %s1489_s11 }
  0x84   : > { %1476 = vset.pattern.permute.xlu1 %v1498_v21  ;;  %1036 = vrot.lane.b32.xlu0 %v1684_v41, %s1490_s12 }
  0x85   : > { %805 = vperm.xlu1 %1476, %v1631_v17  }
  0x88   : > { %1060 = vrot.lane.b32.xlu0 %v1699_v42, %s1491_s13 }
  0x89   : > { %1477 = vset.pattern.permute.xlu1 %v1500_v37 }
  0x8a   : > { %841 = vperm.xlu1 %1477, %v1617_v13  }
  0x8c   : > { %1084 = vrot.lane.b32.xlu0 %v1705_v43, %s1489_s11 }
  0x8e   : > { %845 = vperm.xlu1 %1477, %v1631_v17  }
  0x8f   : > { %v322_v23 = vpop.permute.xlu0 %321  ;;  %v340_v24 = vpop.permute.xlu1 %339 }
  0x90   : > { %1320 = vpush %v322_v23  ;;  %1098 = vrot.lane.b32.xlu0 %v1705_v43, %s1490_s12 }
  0x92   : > { %1479 = vset.pattern.permute.xlu1 %v1499_v22 }
  0x93   : > { %v331_v26 = vpop.permute.xlu0 %330  ;;  %v359_v27 = vpop.permute.xlu1 %358  ;;  %885 = vperm.xlu1 %1479, %v1631_v17  }
  0x94   : > { %1322 = vpush %v331_v26 }
  0x95   : > { %1324 = vpush %v340_v24 }
  0x96   : > { %1326 = vpush %v348_v25  ;;  %v1753_v25 = vrot.slane %v1668_v36, 5 }
  0x97   : > { %1328 = vpush %v1569_v2  ;;  %v366_v28 = vpop.permute.xlu0 %365  ;;  %v373_v29 = vpop.permute.xlu1 %372  ;;  %967 = vrot.lane.b32.xlu1 %v1668_v36, %s1491_s13 }
  0x98   : > { %1330 = vpush %v359_v27  ;;  %1480 = vset.pattern.permute.xlu1 %v1492_v11 }
  0x99   : > { %1332 = vpush %v366_v28 }
  0x9a   : > { %1334 = vpush %v373_v29 }
  0x9b   : > { %1336 = vpush %v381_v30  ;;  %v392_v31 = vpop.permute.xlu0 %391  ;;  %v399_v32 = vpop.permute.xlu1 %398  ;;  %991 = vrot.lane.b32.xlu1 %v1678_v40, %s1489_s11 }
  0x9c   : > { %1338 = vpush %v1579_v3 }
  0x9d   : > { %1340 = vpush %v392_v31 }
  0x9e   : > { %1342 = vpush %v399_v32 }
  0x9f   : > { %v406_v34 = vpop.permute.xlu0 %405  ;;  %v425_v35 = vpop.permute.xlu1 %424  ;;  %1005 = vrot.lane.b32.xlu1 %v1678_v40, %s1490_s12 }
  0xa0   : > { %1344 = vpush %v406_v34 }
  0xa1   : > { %1346 = vpush %v414_v33 }
  0xa2   : > { %1348 = vpush %v1585_v4 }
  0xa3   : > { %1350 = vpush %v425_v35  ;;  %v432_v38 = vpop.permute.xlu0 %431  ;;  %v439_v39 = vpop.permute.xlu1 %438  ;;  %1029 = vrot.lane.b32.xlu1 %v1684_v41, %s1491_s13 }
  0xa4   : > { %1352 = vpush %v432_v38 }
  0xa5   : > { %1354 = vpush %v439_v39 }
  0xa7   : > { %1053 = vrot.lane.b32.xlu1 %v1699_v42, %s1489_s11 }
  0xab   : > { %1067 = vrot.lane.b32.xlu1 %v1699_v42, %s1490_s12 }
  0xaf   : > { %1091 = vrot.lane.b32.xlu1 %v1705_v43, %s1491_s13 }
  0xb3   : > { %1115 = vrot.lane.b32.xlu1 %v1753_v25, %s1489_s11 }
  0xc1   : > { %s1321_s21 = spop %1320 }
  0xc2   : > { %v324_v49 = vstv %s1321_s21 }
  0xc3   : > { %v326_v51 = vmul.f32 %v1722_v48, %v324_v49 }
  0xc5   : > { %s1323_s22 = spop %1322  ;;  %v327_v55 = vadd.f32 %v326_v51, %v318_v50  ;;  %v1764_v50 = vpop.permute.xlu1 %587 }
  0xc6   : > { %v333_v53 = vstv %s1323_s22  ;;  %s1325_s23 = spop %1324 }
  0xc7   : > { %v335_v56 = vmul.f32 %v1727_v52, %v333_v53  ;;  %v342_v57 = vstv %s1325_s23  ;;  %s1327_s24 = spop %1326 }
  0xc8   : > { %s1329_s25 = spop %1328  ;;  %v344_v59 = vmul.f32 %v1731_v54, %v342_v57  ;;  %v350_v60 = vstv %s1327_s24  ;;  %s1501_s24 = smov 104  }
  0xc9   : > { %v336_v58 = vadd.f32 %v335_v56, %v327_v55  ;;  %v354_v61 = vstv %s1329_s25  ;;  %s1331_s26 = spop %1330  ;;  %v1766_v51 = vpop.permute.xlu1 %592  ;;  %s1502_s25 = smov 120  }
  0xca   : > { %v356_v62 = vmul.f32 %v354_v61, %v1714_v44  ;;  %v361_v63 = vstv %s1331_s26  ;;  %s1333_s29 = spop %1332  ;;  %v1786_v61 = vpop.permute.xlu0 %613  ;;  %s1503_s26 = smov 96  }
  0xcb   : > { %v363_v0 = vmul.f32 %v1722_v48, %v361_v63  ;;  %v368_v1 = vstv %s1333_s29  ;;  %s1335_s30 = spop %1334  ;;  %v345_v2 = vadd.f32 %v344_v59, %v336_v58 }
  0xcc   : > { %v357_v3 = vadd.f32 %v356_v62, %v350_v60  ;;  %v370_v4 = vmul.f32 %v1727_v52, %v368_v1  ;;  %v375_v5 = vstv %s1335_s30  ;;  %s1337_s9 = spop %1336 }
  0xcd   : > { %s1339_s10 = spop %1338  ;;  %v346_v6 = vmax.f32 %v345_v2, 0.0  ;;  %v377_v8 = vmul.f32 %v1731_v54, %v375_v5  ;;  %v383_v9 = vstv %s1337_s9 }
  0xce   : > { %v364_v7 = vadd.f32 %v363_v0, %v357_v3  ;;  %v387_v10 = vstv %s1339_s10  ;;  %s1341_s14 = spop %1340  ;;  %v1790_v63 = vpop.permute.xlu0 %633 }
  0xcf   : > { %v389_v11 = vmul.f32 %v387_v10, %v1714_v44  ;;  %v394_v12 = vstv %s1341_s14  ;;  %s1343_s15 = spop %1342  ;;  %v347_v13 = vmin.f32 %v346_v6, 6.0  ;;  %s1505_s14 = smov 88  }
  0xd0   : > { %v371_v14 = vadd.f32 %v370_v4, %v364_v7  ;;  %v396_v15 = vmul.f32 %v1722_v48, %v394_v12  ;;  %v401_v16 = vstv %s1343_s15 }
  0xd1   : > { %v390_v17 = vadd.f32 %v389_v11, %v383_v9  ;;  %v403_v18 = vmul.f32 %v1727_v52, %v401_v16  ;;  %s1345_s16 = spop %1344  ;;  %1298 = vmatprep.mubr.msk.f32.mxu0 %vm451_vm0, %v347_v13 }
  0xd2   : > { %v378_v19 = vadd.f32 %v377_v8, %v371_v14  ;;  %v408_v20 = vstv %s1345_s16  ;;  %s1347_s17 = spop %1346  ;;  %v1794_v1 = vpop.permute.xlu0 %645 }
  0xd3   : > { %v397_v21 = vadd.f32 %v396_v15, %v390_v17  ;;  %v410_v22 = vmul.f32 %v1731_v54, %v408_v20  ;;  %s1349_s18 = spop %1348  ;;  %v416_v30 = vstv %s1347_s17 }
  0xd4   : > { %v379_v23 = vmax.f32 %v378_v19, 0.0  ;;  %v420_v24 = vstv %s1349_s18  ;;  %s1351_s19 = spop %1350 }
  0xd5   : > { %v404_v26 = vadd.f32 %v403_v18, %v397_v21  ;;  %v422_v27 = vmul.f32 %v420_v24, %v1714_v44  ;;  %v427_v28 = vstv %s1351_s19  ;;  %s1353_s20 = spop %1352 }
  0xd6   : > { %v380_v29 = vmin.f32 %v379_v23, 6.0  ;;  %v429_v31 = vmul.f32 %v1722_v48, %v427_v28  ;;  %v434_v32 = vstv %s1353_s20  ;;  %s1355_s21 = spop %1354  ;;  %v1798_v3 = vpop.permute.xlu0 %677 }
  0xd7   : > { %v423_v33 = vadd.f32 %v422_v27, %v416_v30  ;;  %v436_v34 = vmul.f32 %v1727_v52, %v434_v32  ;;  %v441_v35 = vstv %s1355_s21  ;;  %v411_v37 = vadd.f32 %v410_v22, %v404_v26  ;;  %v1768_v52 = vpop.permute.xlu1 %609  ;;  %v1837_v22 = vld [vmem:[%s2205_s7] sm:$0xff] }
  0xd8   : > { %1299 = vmatmul.mubr.msk.f32.vlgmr.msra.gmra.mrb[0].mxu0 %vm451_vm0, %v380_v29  ;;  %v443_v39 = vmul.f32 %v1731_v54, %v441_v35  ;;  %1356 = vpush %v1837_v22  ;;  %v981_v28 = vrot.slane %v1837_v22, 1  ;;  %v1043_v35 = vrot.slane %v1837_v22, 3 }
  0xd9   : > { %v430_v38 = vadd.f32 %v429_v31, %v423_v33  ;;  %v412_v44 = vmax.f32 %v411_v37, 0.0  ;;  %1358 = vpush %v1668_v36  ;;  %v1012_v31 = vrot.slane %v1837_v22, 2 }
  0xda   : > { %v1802_v5 = vpop.permute.xlu0 %713 }
  0xdb   : > { %v437_v45 = vadd.f32 %v436_v34, %v430_v38  ;;  %v413_v46 = vmin.f32 %v412_v44, 6.0  ;;  %v1770_v53 = vpop.permute.xlu1 %617  ;;  %v1074_v38 = vrot.slane %v1837_v22, 4 }
  0xdd   : > { %v444_v47 = vadd.f32 %v443_v39, %v437_v45  ;;  %1301 = vmatprep.mubr.msk.f32.mxu1 %vm451_vm0, %v413_v46  ;;  %v1105_v46 = vrot.slane %v1837_v22, 5 }
  0xde   : > { %v1806_v7 = vpop.permute.xlu0 %725 }
  0xdf   : > { %v445_v48 = vmax.f32 %v444_v47, 0.0  ;;  %v1772_v55 = vpop.permute.xlu1 %621 }
  0xe1   : > { %v446_v49 = vmin.f32 %v445_v48, 6.0 }
  0xe2   : > { %v1810_v9 = vpop.permute.xlu0 %757 }
  0xe3   : > { %1302 = vmatmul.mubr.msk.f32.vlgmr.msra.gmra.mrb[0].mxu1 %vm451_vm0, %v446_v49  ;;  %v1774_v54 = vpop.permute.xlu1 %637 }
  0xe6   : > { %v1814_v11 = vpop.permute.xlu0 %793 }
  0xe7   : > { %v1776_v56 = vpop.permute.xlu1 %641 }
  0xea   : > { %v1818_v13 = vpop.permute.xlu0 %801 }
  0xeb   : > { %v1778_v57 = vpop.permute.xlu1 %673 }
  0xee   : > { %v1822_v15 = vpop.permute.xlu0 %873 }
  0xef   : > { %v1780_v58 = vpop.permute.xlu1 %681 }
  0xf2   : > { %v1826_v17 = vpop.permute.xlu0 %877 }
  0xf3   : > { %v1782_v59 = vpop.permute.xlu1 %685 }
  0xf6   : > { %v1830_v19 = vpop.permute.xlu0 %881 }
  0xf7   : > { %v1784_v60 = vpop.permute.xlu1 %717 }
  0xfa   : > { %v1832_v20 = vpop.permute.xlu0 %582 }
  0xfb   : > { %v1788_v62 = vpop.permute.xlu1 %721 }
  0xfe   : > { %v1841_v23 = vpop.permute.xlu0 %597 }
  0xff   : > { %v1792_v0 = vpop.permute.xlu1 %753 }
 0x102   : > { %v961_v26 = vpop.permute.xlu0 %960 }
 0x103   : > { %v1796_v2 = vpop.permute.xlu1 %761  ;;  %1360 = vpush %v961_v26  ;;  %v1883_v26 = vrot.slane %v1668_v36, 6 }
 0x106   : > { %v975_v29 = vpop.permute.xlu0 %974 }
 0x107   : > { %v1800_v4 = vpop.permute.xlu1 %765 }
 0x109   : > { %s2011_s17 = spop %1356 }
 0x10a   : > { %v999_v32 = vpop.permute.xlu0 %998  ;;  %s2013_s18 = spop %1358 }
 0x10b   : > { %v1804_v6 = vpop.permute.xlu1 %797 }
 0x10e   : > { %v1023_v33 = vpop.permute.xlu0 %1022 }
 0x10f   : > { %v1808_v8 = vpop.permute.xlu1 %833 }
 0x112   : > { %v1037_v37 = vpop.permute.xlu0 %1036 }
 0x113   : > { %v1812_v10 = vpop.permute.xlu1 %837 }
 0x116   : > { %v1061_v39 = vpop.permute.xlu0 %1060 }
 0x117   : > { %v1816_v12 = vpop.permute.xlu1 %805 }
 0x11a   : > { %v1085_v44 = vpop.permute.xlu0 %1084 }
 0x11b   : > { %v1820_v14 = vpop.permute.xlu1 %841 }
 0x11e   : > { %v1099_v45 = vpop.permute.xlu0 %1098 }
 0x11f   : > { %v1824_v16 = vpop.permute.xlu1 %845 }
 0x123   : > { %v1828_v18 = vpop.permute.xlu1 %885 }
 0x127   : > { %v968_v21 = vpop.permute.xlu1 %967 }
 0x128   : > { %1362 = vpush %v968_v21 }
 0x129   : > { %1364 = vpush %v975_v29 }
 0x12a   : > { %1366 = vpush %v981_v28 }
 0x12b   : > { %v992_v24 = vpop.permute.xlu1 %991  ;;  %1368 = vpush %v1678_v40 }
 0x12c   : > { %1370 = vpush %v992_v24 }
 0x12d   : > { %1372 = vpush %v999_v32  ;;  %v569_v32 = vlaneseq }
 0x12f   : > { %v1006_v27 = vpop.permute.xlu1 %1005 }
 0x130   : > { %1374 = vpush %v1006_v27  ;;  %v913_v27 = vld [vmem:[%s2206_s3 + $0x8] sm:$0xff] }
 0x131   : > { %1376 = vpush %v1012_v31 }
 0x132   : > { %1378 = vpush %v1684_v41 }
 0x133   : > { %v1030_v30 = vpop.permute.xlu1 %1029  ;;  %1380 = vpush %v1023_v33  ;;  %v570_v33 = vshrl.u32 %v569_v32, 7 }
 0x134   : > { %1382 = vpush %v1030_v30  ;;  %s2015_s19 = spop %1360 }
 0x135   : > { %1384 = vpush %v1037_v37  ;;  %vm571_vm1 = vcmp.lt.s32.totalorder %v570_v33, 1 }
 0x136   : > { %1386 = vpush %v1043_v35 }
 0x137   : > { %v1054_v34 = vpop.permute.xlu1 %1053  ;;  %1388 = vpush %v1699_v42 }
 0x138   : > { %1390 = vpush %v1054_v34 }
 0x139   : > { %1392 = vpush %v1061_v39 }
 0x13b   : > { %v1068_v40 = vpop.permute.xlu1 %1067 }
 0x13c   : > { %1394 = vpush %v1068_v40 }
 0x13d   : > { %1396 = vpush %v1074_v38 }
 0x13e   : > { %1398 = vpush %v1705_v43 }
 0x13f   : > { %v1092_v41 = vpop.permute.xlu1 %1091  ;;  %1400 = vpush %v1085_v44 }
 0x140   : > { %1402 = vpush %v1092_v41 }
 0x141   : > { %1404 = vpush %v1099_v45 }
 0x142   : > { %1406 = vpush %v1105_v46 }
 0x143   : > { %v1116_v47 = vpop.permute.xlu1 %1115  ;;  %1408 = vpush %v1753_v25 }
 0x144   : > { %1410 = vpush %v1116_v47 }
 0x159   : > { %s2017_s20 = spop %1362 }
 0x15a   : > { %s2019_s21 = spop %1364 }
 0x15b   : > { %s2023_s22 = spop %1366 }
 0x15c   : > { %s2025_s23 = spop %1368 }
 0x1ab   : > { %v1853_v42 = vpop.f32.mrb[0].mxu0 }
 0x1ac   : > { %555 = vrot.lane.b32.xlu1 %v1853_v42, %s1501_s24  ;;  %v1857_v48 = vpop.f32.mrb[1].mxu0  ;;  %v649_v43 = vmul.f32 %v1853_v42, %v1774_v54  ;;  %v729_v49 = vmul.f32 %v1853_v42, %v1784_v60  ;;  %v849_v29 = vmul.f32 %v1853_v42, %v1812_v10  ;;  %v625_v38 = vmul.f32 %v1853_v42, %v1786_v61 }
 0x1ad   : > { %553 = vrot.lane.b32.xlu0 %v1857_v48, %s1501_s24  ;;  %v648_v54 = vmul.f32 %v1790_v63, %v1857_v48  ;;  %v728_v60 = vmul.f32 %v1802_v5, %v1857_v48  ;;  %v1893_v63 = vrot.slane %v1668_v36, 7  ;;  %v768_v5 = vmul.f32 %v1792_v0, %v1857_v48  ;;  %v914_v0 = vld [vmem:[%s2206_s3 + $0x10] sm:$0xff] }
 0x1ae   : > { %v769_v36 = vmul.f32 %v1853_v42, %v1810_v9  ;;  %v848_v9 = vmul.f32 %v1808_v8, %v1857_v48  ;;  %v888_v28 = vmul.f32 %v1822_v15, %v1857_v48  ;;  %v915_v8 = vld [vmem:[%s2206_s3 + $0x18] sm:$0xff] }
 0x1b1   : > { %658 = vrot.lane.b32.xlu0 %v649_v43, %s1501_s24 }
 0x1b5   : > { %738 = vrot.lane.b32.xlu0 %v729_v49, %s1502_s25 }
 0x1b6   : > { %v1867_v21 = vpop.f32.mrb[0].mxu1 }
 0x1b7   : > { %v1869_v24 = vpop.f32.mrb[1].mxu1  ;;  %559 = vrot.lane.b32.xlu1 %v1867_v21, %s1501_s24  ;;  %v651_v10 = vmul.f32 %v1867_v21, %v1794_v1  ;;  %v731_v31 = vmul.f32 %v1867_v21, %v1806_v7 }
 0x1b8   : > { %v650_v30 = vmul.f32 %v1776_v56, %v1869_v24  ;;  %v730_v15 = vmul.f32 %v1788_v62, %v1869_v24  ;;  %v770_v56 = vmul.f32 %v1796_v2, %v1869_v24  ;;  %v771_v62 = vmul.f32 %v1867_v21, %v1800_v4 }
 0x1b9   : > { %557 = vrot.lane.b32.xlu0 %v1869_v24, %s1501_s24 }
 0x1bb   : > { %656 = vrot.lane.b32.xlu1 %v648_v54, %s1501_s24 }
 0x1bd   : > { %1122 = vrot.lane.b32.xlu0 %v1753_v25, %s1491_s13 }
 0x1bf   : > { %736 = vrot.lane.b32.xlu1 %v728_v60, %s1502_s25 }
 0x1c1   : > { %1146 = vrot.lane.b32.xlu0 %v1883_v26, %s1489_s11 }
 0x1c3   : > { %1129 = vrot.lane.b32.xlu1 %v1753_v25, %s1490_s12  ;;  %v912_v25 = vld [vmem:[%s2206_s3] sm:$0xff] }
 0x1c5   : > { %1160 = vrot.lane.b32.xlu0 %v1883_v26, %s1490_s12 }
 0x1c7   : > { %1153 = vrot.lane.b32.xlu1 %v1883_v26, %s1491_s13 }
 0x1c9   : > { %1184 = vrot.lane.b32.xlu0 %v1893_v63, %s1491_s13 }
 0x1cb   : > { %1177 = vrot.lane.b32.xlu1 %v1893_v63, %s1489_s11 }
 0x1cd   : > { %776 = vrot.lane.b32.xlu0 %v768_v5, %s1503_s26 }
 0x1cf   : > { %1191 = vrot.lane.b32.xlu1 %v1893_v63, %s1490_s12  ;;  %s1504_s12 = smov 112  }
 0x1d1   : > { %778 = vrot.lane.b32.xlu0 %v769_v36, %s1503_s26 }
 0x1d3   : > { %918 = vperm.xlu1 %1480, %v912_v25  }
 0x1d5   : > { %923 = vperm.xlu0 %1478, %v913_v27  }
 0x1d7   : > { %928 = vperm.xlu1 %1480, %v914_v0   ;;  %v626_v0 = vmul.f32 %v1770_v53, %v1869_v24 }
 0x1d9   : > { %856 = vrot.lane.b32.xlu0 %v848_v9, %s1504_s12 }
 0x1db   : > { %896 = vrot.lane.b32.xlu1 %v888_v28, %s1505_s14  ;;  %v889_v28 = vmul.f32 %v1853_v42, %v1826_v17  ;;  %v1167_v42 = vrot.slane %v1837_v22, 7 }
 0x1dd   : > { %858 = vrot.lane.b32.xlu0 %v849_v29, %s1504_s12 }
 0x1df   : > { %660 = vrot.lane.b32.xlu1 %v650_v30, %s1501_s24 }
 0x1e1   : > { %933 = vperm.xlu0 %1478, %v915_v8   ;;  %v851_v8 = vmul.f32 %v1867_v21, %v1824_v16 }
 0x1e3   : > { %740 = vrot.lane.b32.xlu1 %v730_v15, %s1502_s25 }
 0x1e5   : > { %662 = vrot.lane.b32.xlu0 %v651_v10, %s1501_s24  ;;  %v890_v10 = vmul.f32 %v1830_v19, %v1869_v24  ;;  %s2029_s24 = spop %1370 }
 0x1e7   : > { %780 = vrot.lane.b32.xlu1 %v770_v56, %s1503_s26 }
 0x1e9   : > { %742 = vrot.lane.b32.xlu0 %v731_v31, %s1502_s25 }
 0x1ed   : > { %782 = vrot.lane.b32.xlu0 %v771_v62, %s1503_s26 }
 0x21e   : > { %v556_v1 = vpop.permute.xlu1 %555 }
 0x21f   : > { %v566_v34 = vrot.slane %v556_v1, 7  ;;  %v554_v35 = vpop.permute.xlu0 %553 }
 0x220   : > { %v565_v37 = vrot.slane %v554_v35, 7 }
 0x222   : > { %v574_v2 = vsel %vm571_vm1, %v565_v37, %v566_v34 }
 0x223   : > { %v689_v40 = vmul.f32 %v1798_v3, %v574_v2  ;;  %v601_v7 = vmul.f32 %v1764_v50, %v574_v2  ;;  %v659_v39 = vpop.permute.xlu0 %658  ;;  %v809_v44 = vmul.f32 %v1804_v6, %v574_v2  ;;  %v624_v6 = vmul.f32 %v1768_v52, %v1857_v48 }
 0x224   : > { %v627_v52 = vmul.f32 %v1867_v21, %v1772_v55  ;;  %v850_v55 = vmul.f32 %v1820_v14, %v1869_v24 }
 0x225   : > { %v629_v4 = vadd.f32 %v625_v38, %v601_v7  ;;  %698 = vrot.lane.b32.xlu1 %v689_v40, %s1502_s25 }
 0x227   : > { %v1955_v41 = vadd.f32 %v659_v39, %v629_v4  ;;  %v1957_v45 = vpop.permute.xlu0 %738 }
 0x229   : > { %818 = vrot.lane.b32.xlu1 %v809_v44, %s1504_s12  ;;  %v560_v46 = vpop.permute.xlu1 %559 }
 0x22a   : > { %v568_v47 = vrot.slane %v560_v46, 7 }
 0x22b   : > { %v558_v3 = vpop.permute.xlu0 %557 }
 0x22c   : > { %v575_v50 = vsel %vm571_vm1, %v568_v47, %v565_v37  ;;  %v567_v43 = vrot.slane %v558_v3, 7 }
 0x22d   : > { %v808_v61 = vmul.f32 %v1814_v11, %v575_v50  ;;  %v600_v49 = vmul.f32 %v1832_v20, %v575_v50  ;;  %v657_v54 = vpop.permute.xlu1 %656  ;;  %v688_v60 = vmul.f32 %v1778_v57, %v575_v50 }
 0x22e   : > { %v572_v5 = vsel %vm571_vm1, %v567_v43, %v568_v47  ;;  %v573_v36 = vsel %vm571_vm1, %v566_v34, %v567_v43 }
 0x22f   : > { %v628_v25 = vadd.f32 %v624_v6, %v600_v49  ;;  %v1123_v27 = vpop.permute.xlu0 %1122  ;;  %696 = vrot.lane.b32.xlu0 %v688_v60, %s1502_s25  ;;  %816 = vrot.lane.b32.xlu1 %v808_v61, %s1504_s12  ;;  %v602_v11 = vmul.f32 %v1766_v51, %v573_v36  ;;  %v603_v20 = vmul.f32 %v1841_v23, %v572_v5  ;;  %v1136_v23 = vrot.slane %v1837_v22, 6 }
 0x230   : > { %1412 = vpush %v1123_v27  ;;  %v690_v9 = vmul.f32 %v1780_v58, %v573_v36  ;;  %v691_v58 = vmul.f32 %v1782_v59, %v572_v5  ;;  %v810_v14 = vmul.f32 %v1818_v13, %v573_v36  ;;  %v891_v59 = vmul.f32 %v1867_v21, %v1828_v18 }
 0x231   : > { %v1976_v57 = vadd.f32 %v657_v54, %v628_v25  ;;  %v1978_v48 = vpop.permute.xlu1 %736  ;;  %v1983_v53 = vadd.f32 %v626_v0, %v602_v11  ;;  %v1985_v29 = vadd.f32 %v627_v52, %v603_v20  ;;  %v811_v22 = vmul.f32 %v1816_v12, %v572_v5 }
 0x232   : > { %v952_v49 = vstv %s2011_s17  ;;  %v956_v54 = vstv %s2013_s18  ;;  %v963_v5 = vstv %s2015_s19  ;;  %v983_v36 = vstv %s2023_s22  ;;  %s2218_s17 = sld [smem:[#allocation17_spill]] }
 0x233   : > { %v1147_v51 = vpop.permute.xlu0 %1146  ;;  %700 = vrot.lane.b32.xlu0 %v690_v9, %s1502_s25  ;;  %898 = vrot.lane.b32.xlu1 %v889_v28, %s1505_s14  ;;  %v987_v25 = vstv %s2025_s23  ;;  %v994_v0 = vstv %s2029_s24 }
 0x235   : > { %v1130_v30 = vpop.permute.xlu1 %1129 }
 0x236   : > { %1414 = vpush %v1130_v30 }
 0x237   : > { %860 = vrot.lane.b32.xlu0 %v850_v55, %s1504_s12  ;;  %1416 = vpush %v1136_v23  ;;  %v1161_v17 = vpop.permute.xlu0 %1160  ;;  %702 = vrot.lane.b32.xlu1 %v691_v58, %s1502_s25  ;;  %s2031_s25 = spop %1372 }
 0x238   : > { %1418 = vpush %v1883_v26  ;;  %s2035_s26 = spop %1374 }
 0x239   : > { %v1154_v15 = vpop.permute.xlu1 %1153  ;;  %1420 = vpush %v1147_v51  ;;  %s2037_s29 = spop %1376 }
 0x23a   : > { %1422 = vpush %v1154_v15  ;;  %s2041_s30 = spop %1378  ;;  %v1014_v11 = vstv %s2037_s29 }
 0x23b   : > { %862 = vrot.lane.b32.xlu0 %v851_v8, %s1504_s12  ;;  %1424 = vpush %v1161_v17  ;;  %820 = vrot.lane.b32.xlu1 %v810_v14, %s1504_s12  ;;  %v1185_v16 = vpop.permute.xlu0 %1184  ;;  %s2045_s13 = spop %1380 }
 0x23c   : > { %1426 = vpush %v1167_v42  ;;  %s2047_s11 = spop %1382 }
 0x23d   : > { %v1178_v26 = vpop.permute.xlu1 %1177  ;;  %1428 = vpush %v1893_v63  ;;  %s2049_s9 = spop %1384 }
 0x23e   : > { %1430 = vpush %v1178_v26  ;;  %s2051_s10 = spop %1386 }
 0x23f   : > { %902 = vrot.lane.b32.xlu0 %v891_v59, %s1505_s14  ;;  %1432 = vpush %v1185_v16  ;;  %822 = vrot.lane.b32.xlu1 %v811_v22, %s1504_s12  ;;  %v777_v18 = vpop.permute.xlu0 %776  ;;  %s2053_s12 = spop %1388  ;;  %v1045_v9 = vstv %s2051_s10 }
 0x240   : > { %v1049_v51 = vstv %s2053_s12 }
 0x241   : > { %v1192_v13 = vpop.permute.xlu1 %1191 }
 0x242   : > { %1434 = vpush %v1192_v13 }
 0x243   : > { %900 = vrot.lane.b32.xlu1 %v890_v10, %s1505_s14  ;;  %v779_v12 = vpop.permute.xlu0 %778  ;;  %s2055_s14 = spop %1390 }
 0x244   : > { %s2059_s15 = spop %1392  ;;  %v1056_v30 = vstv %s2055_s14 }
 0x245   : > { %s2061_s16 = spop %1394 }
 0x246   : > { %s2063_s0 = spop %1396 }
 0x247   : > { %s2065_s1 = spop %1398  ;;  %v1076_v58 = vstv %s2063_s0 }
 0x248   : > { %s2067_s2 = spop %1400  ;;  %v1080_v17 = vstv %s2065_s1 }
 0x249   : > { %s2071_s3 = spop %1402  ;;  %v1087_v8 = vstv %s2067_s2 }
 0x24a   : > { %2207 = sst [smem:[#allocation4_spill]] %s2071_s3  ;;  %s2073_s4 = spop %1404 }
 0x24b   : > { %2208 = sst [smem:[#allocation5_spill]] %s2073_s4  ;;  %s2075_s5 = spop %1406 }
 0x24c   : > { %s2078_s6 = spop %1408  ;;  %v1107_v15 = vstv %s2075_s5  ;;  %s2212_s0 = sld [smem:[#allocation4_spill]] }
 0x24d   : > { %s2081_s7 = spop %1410  ;;  %v1111_v26 = vstv %s2078_s6  ;;  %s2213_s1 = sld [smem:[#allocation5_spill]] }
 0x24e   : > { %v1118_v22 = vstv %s2081_s7  ;;  %s2217_s7 = sld [smem:[#allocation3_spill]] }
 0x252   : > { %v2021_v21 = vpop.permute.xlu1 %918 }
 0x254   : > { %v2027_v19 = vpop.permute.xlu0 %923 }
 0x256   : > { %v2033_v24 = vpop.permute.xlu1 %928 }
 0x258   : > { %v2039_v63 = vpop.permute.xlu0 %856 }
 0x25a   : > { %v2043_v56 = vpop.permute.xlu1 %896 }
 0x25c   : > { %v859_v31 = vpop.permute.xlu0 %858 }
 0x25e   : > { %v661_v62 = vpop.permute.xlu1 %660 }
 0x25f   : > { %v670_v47 = vadd.f32 %v661_v62, %v1983_v53 }
 0x260   : > { %v2057_v32 = vpop.permute.xlu0 %933 }
 0x261   : > { %s2085_s27 = spop %1412 }
 0x262   : > { %v741_v33 = vpop.permute.xlu1 %740  ;;  %2209 = sst [smem:[#allocation6_spill]] %s2085_s27 }
 0x264   : > { %v663_v1 = vpop.permute.xlu0 %662 }
 0x265   : > { %v671_v20 = vadd.f32 %v663_v1, %v1985_v29 }
 0x266   : > { %v2069_v34 = vpop.permute.xlu1 %780 }
 0x267   : > { %s2087_s8 = spop %1414 }
 0x268   : > { %v743_v35 = vpop.permute.xlu0 %742  ;;  %2210 = sst [smem:[#allocation7_spill]] %s2087_s8  ;;  %s2089_s28 = spop %1416 }
 0x269   : > { %s2091_s4 = spop %1418  ;;  %v1138_v16 = vstv %s2089_s28 }
 0x26a   : > { %s2094_s3 = spop %1420 }
 0x26b   : > { %s2098_s8 = spop %1422 }
 0x26c   : > { %v2083_v7 = vpop.permute.xlu0 %782  ;;  %2211 = sst [smem:[#allocation8_spill]] %s2098_s8  ;;  %s2102_s27 = spop %1424 }
 0x26d   : > { %s2110_s8 = spop %1426  ;;  %s2216_s5 = sld [smem:[#allocation8_spill]] }
 0x26e   : > { %s2118_s18 = spop %1428 }
 0x26f   : > { %s1431_s19 = spop %1430  ;;  %v1173_v62 = vstv %s2118_s18 }
 0x270   : > { %s2141_s2 = spop %1432 }
 0x273   : > { %s2150_s6 = spop %1434 }
 0x297   : > { %v699_v37 = vpop.permute.xlu1 %698 }
 0x298   : > { %v709_v2 = vadd.f32 %v699_v37, %v1955_v41 }
 0x29a   : > { %v749_v40 = vadd.f32 %v1957_v45, %v709_v2 }
 0x29b   : > { %v819_v39 = vpop.permute.xlu1 %818 }
 0x29c   : > { %v789_v38 = vadd.f32 %v779_v12, %v749_v40  ;;  %v1149_v12 = vstv %s2094_s3  ;;  %s2214_s3 = sld [smem:[#allocation6_spill]] }
 0x29e   : > { %v829_v4 = vadd.f32 %v819_v39, %v789_v38 }
 0x2a0   : > { %v869_v50 = vadd.f32 %v859_v31, %v829_v4 }
 0x2a1   : > { %v697_v44 = vpop.permute.xlu0 %696  ;;  %v817_v45 = vpop.permute.xlu1 %816 }
 0x2a2   : > { %v708_v41 = vadd.f32 %v697_v44, %v1976_v57  ;;  %v1018_v57 = vstv %s2041_s30 }
 0x2a4   : > { %v748_v46 = vadd.f32 %v1978_v48, %v708_v41  ;;  %v1025_v48 = vstv %s2045_s13 }
 0x2a5   : > { %v701_v3 = vpop.permute.xlu0 %700  ;;  %v899_v61 = vpop.permute.xlu1 %898 }
 0x2a6   : > { %v788_v43 = vadd.f32 %v777_v18, %v748_v46  ;;  %v710_v6 = vadd.f32 %v701_v3, %v670_v47  ;;  %v909_v60 = vadd.f32 %v899_v61, %v869_v50  ;;  %v1142_v18 = vstv %s2091_s4  ;;  %s2215_s4 = sld [smem:[#allocation7_spill]] }
 0x2a8   : > { %v828_v27 = vadd.f32 %v817_v45, %v788_v43  ;;  %v937_v52 = vadd.f32 %v2027_v19, %v909_v60  ;;  %v750_v23 = vadd.f32 %v741_v33, %v710_v6  ;;  %v1169_v19 = vstv %s2110_s8  ;;  %s1281_s8 = sshll.u32 %s2217_s7, 6 }
 0x2a9   : > { %v703_v53 = vpop.permute.xlu1 %702 }
 0x2aa   : > { %v868_v28 = vadd.f32 %v2039_v63, %v828_v27  ;;  %v941_v29 = vmax.f32 %v937_v52, 0.0  ;;  %v711_v55 = vadd.f32 %v703_v53, %v671_v20  ;;  %v861_v63 = vpop.permute.xlu0 %860  ;;  %v790_v31 = vadd.f32 %v2069_v34, %v750_v23 }
 0x2ac   : > { %v908_v42 = vadd.f32 %v2043_v56, %v868_v28  ;;  %v945_v14 = vmin.f32 %v941_v29, 6.0  ;;  %v751_v59 = vadd.f32 %v743_v35, %v711_v55  ;;  %v1180_v56 = vstv %s1431_s19 }
 0x2ad   : > { %v821_v10 = vpop.permute.xlu1 %820 }
 0x2ae   : > { %v936_v13 = vadd.f32 %v2021_v21, %v908_v42  ;;  %v965_v1 = vmul.f32 %v963_v5, %v945_v14  ;;  %v996_v37 = vmul.f32 %v994_v0, %v945_v14  ;;  %v1027_v2 = vmul.f32 %v1025_v48, %v945_v14 }
 0x2af   : > { %v830_v40 = vadd.f32 %v821_v10, %v790_v31  ;;  %v791_v35 = vadd.f32 %v2083_v7, %v751_v59  ;;  %v1058_v39 = vmul.f32 %v1056_v30, %v945_v14  ;;  %v1089_v4 = vmul.f32 %v1087_v8, %v945_v14  ;;  %v863_v7 = vpop.permute.xlu0 %862 }
 0x2b0   : > { %v940_v33 = vmax.f32 %v936_v13, 0.0  ;;  %v1120_v21 = vmul.f32 %v1118_v22, %v945_v14  ;;  %v1151_v41 = vmul.f32 %v1149_v12, %v945_v14  ;;  %v1182_v45 = vmul.f32 %v1180_v56, %v945_v14 }
 0x2b1   : > { %v823_v44 = vpop.permute.xlu1 %822  ;;  %v870_v34 = vadd.f32 %v861_v63, %v830_v40  ;;  %v1001_v14 = vstv %s2031_s25  ;;  %v1008_v59 = vstv %s2035_s26  ;;  %v1039_v22 = vstv %s2049_s9 }
 0x2b2   : > { %v944_v38 = vmin.f32 %v940_v33, 6.0  ;;  %v831_v46 = vadd.f32 %v823_v44, %v791_v35  ;;  %v1094_v12 = vstv %s2212_s0  ;;  %v1132_v63 = vstv %s2215_s4 }
 0x2b3   : > { %v1156_v56 = vstv %s2216_s5  ;;  %v1163_v33 = vstv %s2102_s27 }
 0x2b4   : > { %v958_v47 = vmul.f32 %v956_v54, %v944_v38  ;;  %v989_v3 = vmul.f32 %v987_v25, %v944_v38  ;;  %v1020_v50 = vmul.f32 %v1018_v57, %v944_v38  ;;  %v1051_v43 = vmul.f32 %v1049_v51, %v944_v38 }
 0x2b5   : > { %v1082_v61 = vmul.f32 %v1080_v17, %v944_v38  ;;  %v1113_v6 = vmul.f32 %v1111_v26, %v944_v38  ;;  %v1144_v60 = vmul.f32 %v1142_v18, %v944_v38  ;;  %v1175_v5 = vmul.f32 %v1173_v62, %v944_v38  ;;  %v901_v54 = vpop.permute.xlu1 %900 }
 0x2b6   : > { %v959_v27 = vadd.f32 %v958_v47, %v952_v49  ;;  %v990_v0 = vadd.f32 %v989_v3, %v983_v36  ;;  %v1021_v20 = vadd.f32 %v1020_v50, %v1014_v11  ;;  %v1052_v52 = vadd.f32 %v1051_v43, %v1045_v9 }
 0x2b7   : > { %v1083_v48 = vadd.f32 %v1082_v61, %v1076_v58  ;;  %v1114_v28 = vadd.f32 %v1113_v6, %v1107_v15  ;;  %v1145_v53 = vadd.f32 %v1144_v60, %v1138_v16  ;;  %v1176_v23 = vadd.f32 %v1175_v5, %v1169_v19  ;;  %v903_v58 = vpop.permute.xlu0 %902 }
 0x2b8   : > { %v966_v25 = vadd.f32 %v965_v1, %v959_v27  ;;  %v997_v57 = vadd.f32 %v996_v37, %v990_v0  ;;  %v1028_v51 = vadd.f32 %v1027_v2, %v1021_v20  ;;  %v1059_v29 = vadd.f32 %v1058_v39, %v1052_v52 }
 0x2b9   : > { %v1090_v49 = vadd.f32 %v1089_v4, %v1083_v48  ;;  %v1121_v36 = vadd.f32 %v1120_v21, %v1114_v28  ;;  %v1152_v11 = vadd.f32 %v1151_v41, %v1145_v53  ;;  %v1183_v9 = vadd.f32 %v1182_v45, %v1176_v23 }
 0x2ba   : > { %v871_v55 = vadd.f32 %v863_v7, %v831_v46  ;;  %v910_v30 = vadd.f32 %v901_v54, %v870_v34  ;;  %v970_v17 = vstv %s2017_s20  ;;  %v977_v15 = vstv %s2019_s21  ;;  %s305_s20 = scalar_lea.vmem %s2218_s17, %s1281_s8 }
 0x2bb   : > { %v1032_v26 = vstv %s2047_s11  ;;  %v1063_v16 = vstv %s2059_s15  ;;  %v1070_v18 = vstv %s2061_s16  ;;  %v1101_v19 = vstv %s2213_s1 }
 0x2bc   : > { %v911_v42 = vadd.f32 %v903_v58, %v871_v55  ;;  %v938_v8 = vadd.f32 %v2033_v24, %v910_v30  ;;  %v1125_v24 = vstv %s2214_s3  ;;  %v1187_v1 = vstv %s2141_s2 }
 0x2bd   : > { %v1194_v37 = vstv %s2150_s6 }
 0x2be   : > { %v939_v13 = vadd.f32 %v2057_v32, %v911_v42  ;;  %v942_v10 = vmax.f32 %v938_v8, 0.0 }
 0x2c0   : > { %v943_v31 = vmax.f32 %v939_v13, 0.0  ;;  %v946_v62 = vmin.f32 %v942_v10, 6.0 }
 0x2c2   : > { %v947_v2 = vmin.f32 %v943_v31, 6.0  ;;  %v972_v40 = vmul.f32 %v970_v17, %v946_v62  ;;  %v1003_v35 = vmul.f32 %v1001_v14, %v946_v62  ;;  %v1034_v38 = vmul.f32 %v1032_v26, %v946_v62 }
 0x2c3   : > { %v1065_v39 = vmul.f32 %v1063_v16, %v946_v62  ;;  %v1096_v32 = vmul.f32 %v1094_v12, %v946_v62  ;;  %v1127_v4 = vmul.f32 %v1125_v24, %v946_v62  ;;  %v1158_v21 = vmul.f32 %v1156_v56, %v946_v62 }
 0x2c4   : > { %v979_v44 = vmul.f32 %v977_v15, %v947_v2  ;;  %v1010_v41 = vmul.f32 %v1008_v59, %v947_v2  ;;  %v1041_v45 = vmul.f32 %v1039_v22, %v947_v2  ;;  %v1072_v46 = vmul.f32 %v1070_v18, %v947_v2 }
 0x2c5   : > { %v1103_v34 = vmul.f32 %v1101_v19, %v947_v2  ;;  %v1134_v47 = vmul.f32 %v1132_v63, %v947_v2  ;;  %v1165_v3 = vmul.f32 %v1163_v33, %v947_v2  ;;  %v1196_v50 = vmul.f32 %v1194_v37, %v947_v2 }
 0x2c6   : > { %v973_v43 = vadd.f32 %v972_v40, %v966_v25  ;;  %v1004_v61 = vadd.f32 %v1003_v35, %v997_v57  ;;  %v1035_v6 = vadd.f32 %v1034_v38, %v1028_v51  ;;  %v1066_v60 = vadd.f32 %v1065_v39, %v1059_v29 }
 0x2c7   : > { %v1097_v5 = vadd.f32 %v1096_v32, %v1090_v49  ;;  %v1128_v7 = vadd.f32 %v1127_v4, %v1121_v36  ;;  %v1159_v27 = vadd.f32 %v1158_v21, %v1152_v11  ;;  %v1189_v0 = vmul.f32 %v1187_v1, %v946_v62 }
 0x2c8   : > { %v980_v20 = vadd.f32 %v979_v44, %v973_v43  ;;  %v1011_v52 = vadd.f32 %v1010_v41, %v1004_v61  ;;  %v1042_v48 = vadd.f32 %v1041_v45, %v1035_v6  ;;  %v1073_v28 = vadd.f32 %v1072_v46, %v1066_v60 }
 0x2c9   : > { %v1104_v53 = vadd.f32 %v1103_v34, %v1097_v5  ;;  %v1135_v23 = vadd.f32 %v1134_v47, %v1128_v7  ;;  %v1166_v54 = vadd.f32 %v1165_v3, %v1159_v27  ;;  %v1190_v55 = vadd.f32 %v1189_v0, %v1183_v9 }
 0x2ca   : > { %1199 = vst.msk [vmem:[%s305_s20] sm:$0xff] %vm1198_vm2, %v980_v20  ;;  %1200 = vst.msk [vmem:[%s305_s20 + $0x8] sm:$0xff] %vm1198_vm2, %v1011_v52 }
 0x2cb   : > { %1201 = vst.msk [vmem:[%s305_s20 + $0x10] sm:$0xff] %vm1198_vm2, %v1042_v48  ;;  %1202 = vst.msk [vmem:[%s305_s20 + $0x18] sm:$0xff] %vm1198_vm2, %v1073_v28  ;;  %v1197_v25 = vadd.f32 %v1196_v50, %v1190_v55 }
 0x2cc   : > { %1203 = vst.msk [vmem:[%s305_s20 + $0x20] sm:$0xff] %vm1198_vm2, %v1104_v53  ;;  %1204 = vst.msk [vmem:[%s305_s20 + $0x28] sm:$0xff] %vm1198_vm2, %v1135_v23 }
 0x2cd   : > { %1205 = vst.msk [vmem:[%s305_s20 + $0x30] sm:$0xff] %vm1198_vm2, %v1166_v54  ;;  %1206 = vst.msk [vmem:[%s305_s20 + $0x38] sm:$0xff] %vm1198_vm2, %v1197_v25 }
 0x2ce PF: > { %s2219_s21 = sld [smem:[#allocation2_spill]] }
 0x2d4   : > { %s18_s27 = sadd.s32 1, %s2219_s21  }
 0x2d5   : > { %p15_p4 = scmp.ge.s32.totalorder %s18_s27, 4  }
 0x2d7   :  { %17 = sbr.rel (!%p15_p4) target bundleno = 10 (0xa), region = 85 }

</bundles_post_ra>
